<compile_context>
chip_gen: v5e
topology: v5e:2x2
jax: 0.10.0
libtpu: 0.0.40
codegen_flags: <defaults>
</compile_context>

<pallas_src>
import jax
import jax.numpy as jnp
from jax.experimental import pallas as pl
from jax.experimental.pallas import tpu as pltpu


def _make_kernel(heads):
    def kernel(attn_ref, x_ref, xq_ref, wv_ref, wp_ref, o_ref):
        # attn_ref: (1, heads, TQ, Np)   attention rows for this query tile
        # x_ref:    (1, Np, c)           all pixels of this batch group (for v)
        # xq_ref:   (1, TQ, c)           query-tile pixels (residual term)
        # wv_ref:   (heads, c, D)        v-projection weight, per head
        # wp_ref:   (heads, D, c)        gamma * output-projection weight, per head
        # o_ref:    (1, TQ, c)
        x = x_ref[0]                                   # (Np, c)
        acc = xq_ref[0].astype(jnp.float32)            # residual: fmap pixels
        for hd in range(heads):                        # static unroll, heads is small
            v_h = jnp.dot(x, wv_ref[hd],
                          preferred_element_type=jnp.float32)        # (Np, D)
            a_h = attn_ref[0, hd]                                     # (TQ, Np)
            agg = jnp.dot(a_h, v_h,
                          preferred_element_type=jnp.float32)         # (TQ, D)
            acc = acc + jnp.dot(agg, wp_ref[hd],
                                preferred_element_type=jnp.float32)   # (TQ, c)
        o_ref[0] = acc.astype(o_ref.dtype)
    return kernel


def _pick_tile(n_pad):
    # Keep the double-buffered (heads, TQ, N) attn slab comfortably inside scoped
    # VMEM on v5e/v6e/v7x.  n_pad is always a multiple of 128 after padding.
    return 256 if n_pad % 256 == 0 else 128


def spatio_temporal_aggregate2(attn, temporal_attn, fmap, to_v_weight,
                               project_weight, gamma, T):
    """
    attn:           (B, heads, N, N) float32, N = h * T * w
    temporal_attn:  unused by the module's forward (kept for interface parity)
    fmap:           (b, dim, h, w) float32, b = B * T
    to_v_weight:    (inner, dim, 1, 1)   nn.Conv2d(dim, inner, 1, bias=False)
    project_weight: (dim, inner, 1, 1) or None
    gamma:          scalar / (1,) parameter
    returns:        (b, dim, h, w) float32
    """
    del temporal_attn  # not used in the reference forward
    b, c, h, w = fmap.shape
    assert b % T == 0
    B = b // T
    inner = to_v_weight.shape[0]
    heads = attn.shape[1]
    D = inner // heads
    N = h * T * w
    assert attn.shape == (B, heads, N, N)

    # ---- layout glue (pure reshape/transpose): fmap -> x (B, N, c), channels last,
    # pixel order i = x_row * (T*w) + t*w + w_col, matching the einops rearranges.
    x = fmap.reshape(B, T, c, h, w)
    x = jnp.transpose(x, (0, 3, 1, 4, 2)).reshape(B, N, c)      # (B, N, c)

    # ---- weights: per-head blocks, gamma folded into the projection weight.
    Wv = to_v_weight[:, :, 0, 0].astype(jnp.float32)            # (inner, c)
    wv_h = jnp.transpose(Wv.reshape(heads, D, c), (0, 2, 1))    # (heads, c, D)
    if project_weight is not None:
        Wp_t = project_weight[:, :, 0, 0].astype(jnp.float32).T  # (inner, c)
    else:
        Wp_t = jnp.eye(inner, dtype=jnp.float32)                 # dim == inner case
    g = jnp.reshape(gamma, ()).astype(jnp.float32)
    wp_h = (g * Wp_t).reshape(heads, D, c)                       # (heads, D, c)

    # ---- pad N to a multiple of 128 (lane-dense, (8,128)-tileable). Padded attn
    # rows/cols are zero and padded x rows are zero, so they contribute nothing.
    N_pad = ((N + 127) // 128) * 128
    if N_pad != N:
        pn = N_pad - N
        x = jnp.pad(x, ((0, 0), (0, pn), (0, 0)))
        attn = jnp.pad(attn, ((0, 0), (0, 0), (0, pn), (0, pn)))

    TQ = _pick_tile(N_pad)
    grid = (B, N_pad // TQ)

    out = pl.pallas_call(
        _make_kernel(heads),
        out_shape=jax.ShapeDtypeStruct((B, N_pad, c), jnp.float32),
        grid_spec=pltpu.PrefetchScalarGridSpec(
            num_scalar_prefetch=0,
            grid=grid,
            in_specs=[
                pl.BlockSpec((1, heads, TQ, N_pad), lambda bi, it: (bi, 0, it, 0)),
                pl.BlockSpec((1, N_pad, c),          lambda bi, it: (bi, 0, 0)),
                pl.BlockSpec((1, TQ, c),             lambda bi, it: (bi, it, 0)),
                pl.BlockSpec((heads, c, D),          lambda bi, it: (0, 0, 0)),
                pl.BlockSpec((heads, D, c),          lambda bi, it: (0, 0, 0)),
            ],
            out_specs=pl.BlockSpec((1, TQ, c), lambda bi, it: (bi, it, 0)),
        ),
        compiler_params=pltpu.CompilerParams(
            dimension_semantics=("parallel", "parallel"),
            vmem_limit_bytes=64 * 1024 * 1024),
    )(attn, x, x, wv_h, wp_h)

    # ---- layout glue back: (B, N, c) -> (B*T, c, h, w)
    y = out[:, :N, :].reshape(B, h, T, w, c)
    y = jnp.transpose(y, (0, 2, 4, 1, 3)).reshape(b, c, h, w)
    return y.astype(fmap.dtype)


def spatio_temporal_aggregate2_ref(attn, fmap, to_v_weight, project_weight, gamma, T):
    """Pure-JAX reference mirroring the PyTorch forward."""
    b, c, h, w = fmap.shape
    B = b // T
    inner = to_v_weight.shape[0]
    heads = attn.shape[1]
    D = inner // heads
    hi = jax.lax.Precision.HIGHEST

    Wv = to_v_weight[:, :, 0, 0]                                  # (inner, c)
    v = jnp.einsum('oc,bchw->bohw', Wv, fmap, precision=hi)       # (b, inner, h, w)
    # '(B T) C H W -> B C H (T W)'
    v = v.reshape(B, T, inner, h, w)
    v = jnp.transpose(v, (0, 2, 3, 1, 4)).reshape(B, inner, h, T * w)
    # 'b (h d) x y -> b h (x y) d'
    v = v.reshape(B, heads, D, h, T * w)
    v = jnp.transpose(v, (0, 1, 3, 4, 2)).reshape(B, heads, h * T * w, D)
    out = jnp.einsum('bhij,bhjd->bhid', attn, v, precision=hi)    # (B, heads, N, D)
    # 'b h (x y) d -> b (h d) x y'
    out = out.reshape(B, heads, h, T * w, D)
    out = jnp.transpose(out, (0, 1, 4, 2, 3)).reshape(B, inner, h, T * w)
    # 'B C H (T W) -> (B T) C H W'
    out = out.reshape(B, inner, h, T, w)
    out = jnp.transpose(out, (0, 3, 1, 2, 4)).reshape(b, inner, h, w)
    if project_weight is not None:
        Wp = project_weight[:, :, 0, 0]                           # (c, inner)
        out = jnp.einsum('oc,bchw->bohw', Wp, out, precision=hi)
    g = jnp.reshape(gamma, ())
    return fmap + g * out


if __name__ == "__main__":
    # Small shapes: heads=4, dim_head=32 -> inner_dim=128; dim=32 (!= inner, so the
    # projection conv is exercised); args.T = 3 -> T = 2 temporal frames; B=2 groups
    # -> b = 4 frames; spatial 8x8 -> N = h * T * w = 128 (lane-aligned).
    heads, dim_head = 4, 32
    inner = heads * dim_head
    dim = 32
    T = 2
    B = 2
    b = B * T
    h, w = 8, 8
    N = h * T * w

    key = jax.random.PRNGKey(0)
    k1, k2, k3, k4, k5 = jax.random.split(key, 5)
    fmap = jax.random.normal(k1, (b, dim, h, w), dtype=jnp.float32)
    attn = jax.nn.softmax(
        jax.random.normal(k2, (B, heads, N, N), dtype=jnp.float32), axis=-1)
    temporal_attn = jax.nn.softmax(
        jax.random.normal(k3, (B, 1, N, N), dtype=jnp.float32), axis=-1)  # unused
    to_v_w = 0.1 * jax.random.normal(k4, (inner, dim, 1, 1), dtype=jnp.float32)
    proj_w = 0.1 * jax.random.normal(k5, (dim, inner, 1, 1), dtype=jnp.float32)
    gamma = jnp.array([0.3], dtype=jnp.float32)   # nonzero so the aggregate path is tested

    out = spatio_temporal_aggregate2(attn, temporal_attn, fmap, to_v_w, proj_w, gamma, T)
    out = jax.block_until_ready(out)

    ref = spatio_temporal_aggregate2_ref(attn, fmap, to_v_w, proj_w, gamma, T)
    assert out.shape == fmap.shape
    err = float(jnp.max(jnp.abs(out - ref)))
    assert jnp.allclose(out, ref, atol=1e-4, rtol=1e-4), f"mismatch vs reference, max err {err}"

    print("KERNEL_OK")
</pallas_src>

<mosaic_0001>
module attributes {stable_mosaic.version = 11 : i64} {
  func.func @kernel(%arg0: i32, %arg1: i32, %arg2: memref<1x4x128x128xf32, #tpu.memory_space<vmem>>, %arg3: memref<1x128x32xf32, #tpu.memory_space<vmem>>, %arg4: memref<1x128x32xf32, #tpu.memory_space<vmem>>, %arg5: memref<4x32x32xf32, #tpu.memory_space<vmem>>, %arg6: memref<4x32x32xf32, #tpu.memory_space<vmem>>, %arg7: memref<1x128x32xf32, #tpu.memory_space<vmem>>) attributes {dimension_semantics = [#tpu.dimension_semantics<parallel>, #tpu.dimension_semantics<parallel>], iteration_bounds = array<i64: 2, 1>, scalar_prefetch = 0 : i64, scratch_operands = 0 : i64, tpu.core_type = #tpu.core_type<tc>, window_params = [{transform_indices = @transform_0, window_bounds = array<i64: 1, 4, 128, 128>}, {transform_indices = @transform_1, window_bounds = array<i64: 1, 128, 32>}, {transform_indices = @transform_2, window_bounds = array<i64: 1, 128, 32>}, {pipeline_mode = #tpu.pipeline_mode<synchronous>, transform_indices = @transform_3, window_bounds = array<i64: 4, 32, 32>}, {pipeline_mode = #tpu.pipeline_mode<synchronous>, transform_indices = @transform_4, window_bounds = array<i64: 4, 32, 32>}, {transform_indices = @transform_5, window_bounds = array<i64: 1, 128, 32>}]} {
    %c0 = arith.constant 0 : index
    %c0_0 = arith.constant 0 : index
    %c0_1 = arith.constant 0 : index
    %0 = vector.load %arg3[%c0, %c0_0, %c0_1] : memref<1x128x32xf32, #tpu.memory_space<vmem>>, vector<1x128x32xf32>
    %1 = vector.shape_cast %0 : vector<1x128x32xf32> to vector<128x32xf32>
    %c0_2 = arith.constant 0 : index
    %c0_3 = arith.constant 0 : index
    %c0_4 = arith.constant 0 : index
    %2 = vector.load %arg4[%c0_2, %c0_3, %c0_4] : memref<1x128x32xf32, #tpu.memory_space<vmem>>, vector<1x128x32xf32>
    %3 = vector.shape_cast %2 : vector<1x128x32xf32> to vector<128x32xf32>
    %c0_5 = arith.constant 0 : index
    %c0_6 = arith.constant 0 : index
    %c0_7 = arith.constant 0 : index
    %4 = vector.load %arg5[%c0_5, %c0_6, %c0_7] : memref<4x32x32xf32, #tpu.memory_space<vmem>>, vector<1x32x32xf32>
    %5 = vector.shape_cast %4 : vector<1x32x32xf32> to vector<32x32xf32>
    %cst = arith.constant dense<0.000000e+00> : vector<128x32xf32>
    %6 = tpu.matmul %1, %5, %cst {dimension_numbers = #tpu.dot_dimension_numbers<[1], [0], [0], [1], [0, 0, 1, 1], [], []>} : vector<128x32xf32>, vector<32x32xf32>, vector<128x32xf32> -> vector<128x32xf32>
    %c0_8 = arith.constant 0 : index
    %c0_9 = arith.constant 0 : index
    %c0_10 = arith.constant 0 : index
    %c0_11 = arith.constant 0 : index
    %7 = vector.load %arg2[%c0_8, %c0_9, %c0_10, %c0_11] : memref<1x4x128x128xf32, #tpu.memory_space<vmem>>, vector<1x1x128x128xf32>
    %8 = vector.shape_cast %7 : vector<1x1x128x128xf32> to vector<128x128xf32>
    %cst_12 = arith.constant dense<0.000000e+00> : vector<128x32xf32>
    %9 = tpu.matmul %8, %6, %cst_12 {dimension_numbers = #tpu.dot_dimension_numbers<[1], [0], [0], [1], [0, 0, 1, 1], [], []>} : vector<128x128xf32>, vector<128x32xf32>, vector<128x32xf32> -> vector<128x32xf32>
    %c0_13 = arith.constant 0 : index
    %c0_14 = arith.constant 0 : index
    %c0_15 = arith.constant 0 : index
    %10 = vector.load %arg6[%c0_13, %c0_14, %c0_15] : memref<4x32x32xf32, #tpu.memory_space<vmem>>, vector<1x32x32xf32>
    %11 = vector.shape_cast %10 : vector<1x32x32xf32> to vector<32x32xf32>
    %cst_16 = arith.constant dense<0.000000e+00> : vector<128x32xf32>
    %12 = tpu.matmul %9, %11, %cst_16 {dimension_numbers = #tpu.dot_dimension_numbers<[1], [0], [0], [1], [0, 0, 1, 1], [], []>} : vector<128x32xf32>, vector<32x32xf32>, vector<128x32xf32> -> vector<128x32xf32>
    %13 = arith.addf %3, %12 : vector<128x32xf32>
    %c1 = arith.constant 1 : index
    %c0_17 = arith.constant 0 : index
    %c0_18 = arith.constant 0 : index
    %14 = vector.load %arg5[%c1, %c0_17, %c0_18] : memref<4x32x32xf32, #tpu.memory_space<vmem>>, vector<1x32x32xf32>
    %15 = vector.shape_cast %14 : vector<1x32x32xf32> to vector<32x32xf32>
    %cst_19 = arith.constant dense<0.000000e+00> : vector<128x32xf32>
    %16 = tpu.matmul %1, %15, %cst_19 {dimension_numbers = #tpu.dot_dimension_numbers<[1], [0], [0], [1], [0, 0, 1, 1], [], []>} : vector<128x32xf32>, vector<32x32xf32>, vector<128x32xf32> -> vector<128x32xf32>
    %c0_20 = arith.constant 0 : index
    %c1_21 = arith.constant 1 : index
    %c0_22 = arith.constant 0 : index
    %c0_23 = arith.constant 0 : index
    %17 = vector.load %arg2[%c0_20, %c1_21, %c0_22, %c0_23] : memref<1x4x128x128xf32, #tpu.memory_space<vmem>>, vector<1x1x128x128xf32>
    %18 = vector.shape_cast %17 : vector<1x1x128x128xf32> to vector<128x128xf32>
    %cst_24 = arith.constant dense<0.000000e+00> : vector<128x32xf32>
    %19 = tpu.matmul %18, %16, %cst_24 {dimension_numbers = #tpu.dot_dimension_numbers<[1], [0], [0], [1], [0, 0, 1, 1], [], []>} : vector<128x128xf32>, vector<128x32xf32>, vector<128x32xf32> -> vector<128x32xf32>
    %c1_25 = arith.constant 1 : index
    %c0_26 = arith.constant 0 : index
    %c0_27 = arith.constant 0 : index
    %20 = vector.load %arg6[%c1_25, %c0_26, %c0_27] : memref<4x32x32xf32, #tpu.memory_space<vmem>>, vector<1x32x32xf32>
    %21 = vector.shape_cast %20 : vector<1x32x32xf32> to vector<32x32xf32>
    %cst_28 = arith.constant dense<0.000000e+00> : vector<128x32xf32>
    %22 = tpu.matmul %19, %21, %cst_28 {dimension_numbers = #tpu.dot_dimension_numbers<[1], [0], [0], [1], [0, 0, 1, 1], [], []>} : vector<128x32xf32>, vector<32x32xf32>, vector<128x32xf32> -> vector<128x32xf32>
    %23 = arith.addf %13, %22 : vector<128x32xf32>
    %c2 = arith.constant 2 : index
    %c0_29 = arith.constant 0 : index
    %c0_30 = arith.constant 0 : index
    %24 = vector.load %arg5[%c2, %c0_29, %c0_30] : memref<4x32x32xf32, #tpu.memory_space<vmem>>, vector<1x32x32xf32>
    %25 = vector.shape_cast %24 : vector<1x32x32xf32> to vector<32x32xf32>
    %cst_31 = arith.constant dense<0.000000e+00> : vector<128x32xf32>
    %26 = tpu.matmul %1, %25, %cst_31 {dimension_numbers = #tpu.dot_dimension_numbers<[1], [0], [0], [1], [0, 0, 1, 1], [], []>} : vector<128x32xf32>, vector<32x32xf32>, vector<128x32xf32> -> vector<128x32xf32>
    %c0_32 = arith.constant 0 : index
    %c2_33 = arith.constant 2 : index
    %c0_34 = arith.constant 0 : index
    %c0_35 = arith.constant 0 : index
    %27 = vector.load %arg2[%c0_32, %c2_33, %c0_34, %c0_35] : memref<1x4x128x128xf32, #tpu.memory_space<vmem>>, vector<1x1x128x128xf32>
    %28 = vector.shape_cast %27 : vector<1x1x128x128xf32> to vector<128x128xf32>
    %cst_36 = arith.constant dense<0.000000e+00> : vector<128x32xf32>
    %29 = tpu.matmul %28, %26, %cst_36 {dimension_numbers = #tpu.dot_dimension_numbers<[1], [0], [0], [1], [0, 0, 1, 1], [], []>} : vector<128x128xf32>, vector<128x32xf32>, vector<128x32xf32> -> vector<128x32xf32>
    %c2_37 = arith.constant 2 : index
    %c0_38 = arith.constant 0 : index
    %c0_39 = arith.constant 0 : index
    %30 = vector.load %arg6[%c2_37, %c0_38, %c0_39] : memref<4x32x32xf32, #tpu.memory_space<vmem>>, vector<1x32x32xf32>
    %31 = vector.shape_cast %30 : vector<1x32x32xf32> to vector<32x32xf32>
    %cst_40 = arith.constant dense<0.000000e+00> : vector<128x32xf32>
    %32 = tpu.matmul %29, %31, %cst_40 {dimension_numbers = #tpu.dot_dimension_numbers<[1], [0], [0], [1], [0, 0, 1, 1], [], []>} : vector<128x32xf32>, vector<32x32xf32>, vector<128x32xf32> -> vector<128x32xf32>
    %33 = arith.addf %23, %32 : vector<128x32xf32>
    %c3 = arith.constant 3 : index
    %c0_41 = arith.constant 0 : index
    %c0_42 = arith.constant 0 : index
    %34 = vector.load %arg5[%c3, %c0_41, %c0_42] : memref<4x32x32xf32, #tpu.memory_space<vmem>>, vector<1x32x32xf32>
    %35 = vector.shape_cast %34 : vector<1x32x32xf32> to vector<32x32xf32>
    %cst_43 = arith.constant dense<0.000000e+00> : vector<128x32xf32>
    %36 = tpu.matmul %1, %35, %cst_43 {dimension_numbers = #tpu.dot_dimension_numbers<[1], [0], [0], [1], [0, 0, 1, 1], [], []>} : vector<128x32xf32>, vector<32x32xf32>, vector<128x32xf32> -> vector<128x32xf32>
    %c0_44 = arith.constant 0 : index
    %c3_45 = arith.constant 3 : index
    %c0_46 = arith.constant 0 : index
    %c0_47 = arith.constant 0 : index
    %37 = vector.load %arg2[%c0_44, %c3_45, %c0_46, %c0_47] : memref<1x4x128x128xf32, #tpu.memory_space<vmem>>, vector<1x1x128x128xf32>
    %38 = vector.shape_cast %37 : vector<1x1x128x128xf32> to vector<128x128xf32>
    %cst_48 = arith.constant dense<0.000000e+00> : vector<128x32xf32>
    %39 = tpu.matmul %38, %36, %cst_48 {dimension_numbers = #tpu.dot_dimension_numbers<[1], [0], [0], [1], [0, 0, 1, 1], [], []>} : vector<128x128xf32>, vector<128x32xf32>, vector<128x32xf32> -> vector<128x32xf32>
    %c3_49 = arith.constant 3 : index
    %c0_50 = arith.constant 0 : index
    %c0_51 = arith.constant 0 : index
    %40 = vector.load %arg6[%c3_49, %c0_50, %c0_51] : memref<4x32x32xf32, #tpu.memory_space<vmem>>, vector<1x32x32xf32>
    %41 = vector.shape_cast %40 : vector<1x32x32xf32> to vector<32x32xf32>
    %cst_52 = arith.constant dense<0.000000e+00> : vector<128x32xf32>
    %42 = tpu.matmul %39, %41, %cst_52 {dimension_numbers = #tpu.dot_dimension_numbers<[1], [0], [0], [1], [0, 0, 1, 1], [], []>} : vector<128x32xf32>, vector<32x32xf32>, vector<128x32xf32> -> vector<128x32xf32>
    %43 = arith.addf %33, %42 : vector<128x32xf32>
    %c0_53 = arith.constant 0 : index
    %c0_54 = arith.constant 0 : index
    %c0_55 = arith.constant 0 : index
    %44 = vector.load %arg7[%c0_53, %c0_54, %c0_55] : memref<1x128x32xf32, #tpu.memory_space<vmem>>, vector<1x128x32xf32>
    %45 = vector.shape_cast %44 : vector<1x128x32xf32> to vector<128x32xf32>
    %46 = vector.shape_cast %43 : vector<128x32xf32> to vector<1x128x32xf32>
    tpu.vector_store %arg7[%c0_53, %c0_54, %c0_55], %46 {strides = array<i32>} : memref<1x128x32xf32, #tpu.memory_space<vmem>>, vector<1x128x32xf32>,
    return
  }
  func.func @transform_0(%arg0: i32, %arg1: i32) -> (i32, i32, i32, i32) {
    %c0_i32 = arith.constant 0 : i32
    %c0_i32_0 = arith.constant 0 : i32
    %c0_i32_1 = arith.constant 0 : i32
    return %arg0, %c0_i32, %arg1, %c0_i32_0 : i32, i32, i32, i32
  }
  func.func @transform_1(%arg0: i32, %arg1: i32) -> (i32, i32, i32) {
    %c0_i32 = arith.constant 0 : i32
    %c0_i32_0 = arith.constant 0 : i32
    %c0_i32_1 = arith.constant 0 : i32
    return %arg0, %c0_i32, %c0_i32_0 : i32, i32, i32
  }
  func.func @transform_2(%arg0: i32, %arg1: i32) -> (i32, i32, i32) {
    %c0_i32 = arith.constant 0 : i32
    %c0_i32_0 = arith.constant 0 : i32
    return %arg0, %arg1, %c0_i32 : i32, i32, i32
  }
  func.func @transform_3(%arg0: i32, %arg1: i32) -> (i32, i32, i32) {
    %c0_i32 = arith.constant 0 : i32
    %c0_i32_0 = arith.constant 0 : i32
    %c0_i32_1 = arith.constant 0 : i32
    %c0_i32_2 = arith.constant 0 : i32
    return %c0_i32, %c0_i32_0, %c0_i32_1 : i32, i32, i32
  }
  func.func @transform_4(%arg0: i32, %arg1: i32) -> (i32, i32, i32) {
    %c0_i32 = arith.constant 0 : i32
    %c0_i32_0 = arith.constant 0 : i32
    %c0_i32_1 = arith.constant 0 : i32
    %c0_i32_2 = arith.constant 0 : i32
    return %c0_i32, %c0_i32_0, %c0_i32_1 : i32, i32, i32
  }
  func.func @transform_5(%arg0: i32, %arg1: i32) -> (i32, i32, i32) {
    %c0_i32 = arith.constant 0 : i32
    %c0_i32_0 = arith.constant 0 : i32
    return %arg0, %arg1, %c0_i32 : i32, i32, i32
  }
}

</mosaic_0001>

<bundles_post_ra>
// kernel: tpu_custom_call.1
= control target key start
LH: loop header
LB: loop body
LE: loop exit
PB: predicated region body
PF: predicated region fallthrough
CT: control target
= control target key end

     0   :  { %10 = vsyncpa [#allocation3], 0  ;;  %s2862_s0 = inlined_call_operand.hbm [shape: f32[2,4,128,128], index: 0, kind: input, shape index: {}]   ;;  %s2863_s1 = inlined_call_operand.vmem [shape: f32[2,128,32], index: 1, kind: input, shape index: {}]   ;;  %s2864_s2 = inlined_call_operand.vmem [shape: f32[2,128,32], index: 2, kind: input, shape index: {}]   ;;  %s2865_s3 = inlined_call_operand.vmem [shape: f32[4,32,32], index: 3, kind: input, shape index: {}]   ;;  %s2866_s4 = inlined_call_operand.vmem [shape: f32[4,32,32], index: 4, kind: input, shape index: {}]   ;;  %s2867_s5 = inlined_call_operand.vmem [shape: f32[2,128,32], index: 5, kind: output, shape index: {}]  }
   0x1   :  { %12 = vsyncpa [#allocation3 + $0x1], 0  ;;  %s2106_s18 = smov 0   ;;  %s2108_s19 = smov 0  }
   0x2   :  { %s2110_s20 = smov 0   ;;  %s2112_s21 = smov 0  }
   0x3   :  { %s2114_s22 = smov 0   ;;  %s2116_s23 = smov 0  }
   0x4 LB: > { %s1694_s24 = sadd.s32 4294967295, %s2072_s23   ;;  %s30_s25 = sadd.s32 1, %s2068_s22  ;;  %s2072_s23 = sphi %s2116_s23, %s18_s23   ;;  %s2068_s22 = sphi %s2114_s22, %s2874_s22   ;;  %s2064_s21 = sphi %s2112_s21, %s2873_s21   ;;  %s2060_s20 = sphi %s2110_s20, %s2872_s20   ;;  %s2056_s19 = sphi %s2108_s19, %s2871_s19   ;;  %s2052_s18 = sphi %s2106_s18, %s2870_s18  }
   0x5   : > { %p32_p0 = scmp.ge.s32.totalorder %s30_s25, 2  ;;  %s39_s26 = sadd.s32 1, %s2060_s20 }
   0x6   : > { %p46_p1 = scmp.ne.s32.totalorder %s2060_s20, %s2056_s19  ;;  %p47_p2 = scmp.eq.s32.totalorder %s2072_s23, 0 }
   0x7   : > { %s2876_s25 = smov (%p32_p0, %s30_s25), 0  ;;  %p52_p4 = scmp.ne.s32.totalorder %s2056_s19, %s2052_s18 }
   0x8   : > { %p2142_p3 = por %p47_p2, %p46_p1  ;;  %s34_s28 = ssub.s32 %s2068_s22, %s2876_s25 }
   0x9   : > { %p53_p5 = scmp.eq.s32.totalorder %s1694_s24, 0  ;;  %p37_p6 = scmp.eq.s32.totalorder %s34_s28, 0 }
   0xa   : > { %p1941_p8 = scmp.lt.s32.totalorder %s2072_s23, 2  ;;  %s206_s6 = sand.u32 1, %s2060_s20  }
   0xb   : > { %p2149_p7 = por %p53_p5, %p52_p4  ;;  %s1911_s7 = sshll.u32 %s2068_s22, 9 }
   0xc   : > { %s2155_s30 = scalar_select %p37_p6, %s2060_s20, %s39_s26  }
   0xd   : > { %s1698_s8 = sshll.u32 %s206_s6, 9  ;;  %s217_s11 = scalar_lea.hbm %s2862_s0, %s1911_s7 }
   0xe   : > { %s218_s12 = sshll.u32 %s217_s11, 4  ;;  %s210_s13 = scalar_lea.vmem [#allocation2], %s1698_s8  ;;  %s219_s12 = int_to_ptr.hbm [resolvable:$true] %s218_s12 }
   0xf   : > { %s220_s14 = sshll.u32 %s210_s13, 4  ;;  %p1938_p9 = pnand %p1941_p8, %p2142_p3  ;;  %s221_s14 = int_to_ptr.vmem [resolvable:$true] %s220_s14 }
  0x10   : > { %p1701_p10 = scmp.ge.s32.totalorder %s2072_s23, 1  ;;  %p249_p11 = scmp.lt.s32.totalorder %s2072_s23, 3 }
  0x11   : > { %s207_s15 = scalar_lea.sflag [#allocation3], %s206_s6  ;;  %s2074_s16 = smov 128  }
  0x12   : > { %s2075_s17 = smov 8   ;;  %p250_p12 = pnand %p1701_p10, %p249_p11 }
  0x13   : > { %1940 = dma.hbm_to_vmem [thread:$0]  (!%p1938_p9), %s219_s12, 8192, %s221_s14, %s207_s15, %s2074_s16, %s2074_s16, %s2075_s17  }
  0x14   : > { %253 = sbr.rel (%p250_p12) target bundleno = 1348 (0x544), region = 40  ;;  %s255_s18 = sand.u32 (!%p250_p12), 1, %s2056_s19  }
  0x15   : > { %s1702_s24 = sshll.u32 (!%p250_p12), %s255_s18, 9  ;;  %s256_s26 = scalar_lea.sflag (!%p250_p12), [#allocation3], %s255_s18 }
  0x16   : > { %s2167_s28 = scalar_lea.vmem (!%p250_p12), [#allocation2], %s1702_s24 }
  0x19   : > { %2047 = dma.done.wait (%p2149_p7), %s256_s26, 8192  }
  0x1a   : > { %2049 = vsyncadd (%p2149_p7), %s256_s26, 4294959104  ;;  %p306_p13 = scmp.lt.s32.totalorder %s2064_s21, 1  ;;  %v366_v0 = vld [vmem:[%s2865_s3 + $0x18] sm:$0xff]  ;;  %v365_v2 = vld [vmem:[%s2865_s3 + $0x10] sm:$0xff]  ;;  %vm367_vm0 = vcmask 261120  }
  0x1b   : > { %v1744_v1 = vld [vmem:[%s2865_s3 + $0x38] sm:$0xff]  ;;  %428 = vmatpush.msra.mxu0 %v366_v0  ;;  %v1743_v3 = vld [vmem:[%s2865_s3 + $0x30] sm:$0xff]  ;;  %v364_v4 = vld [vmem:[%s2865_s3 + $0x8] sm:$0xff]  ;;  %1915 = vmatpush.msra.mxu2 %v366_v0 }
  0x1c   : > { %s2878_s21 = smov (!%p306_p13, %s2064_s21), 1  ;;  %712 = vmatpush.msra.mxu3 %v1744_v1  ;;  %v1742_v5 = vld [vmem:[%s2865_s3 + $0x28] sm:$0xff]  ;;  %v363_v6 = vld [vmem:[%s2865_s3] sm:$0xff]  ;;  %v1800_v21 = vld [vmem:[%s2865_s3 + $0x58] sm:$0xff] }
  0x1d   : > { %s2175_s27 = sshll.u32 %s2878_s21, 7  ;;  %429 = vmatpush.msra.mxu0 %v365_v2  ;;  %v1741_v7 = vld [vmem:[%s2865_s3 + $0x20] sm:$0xff]  ;;  %1916 = vmatpush.msra.mxu2 %v365_v2  ;;  %v1799_v22 = vld [vmem:[%s2865_s3 + $0x50] sm:$0xff]  ;;  %v1798_v23 = vld [vmem:[%s2865_s3 + $0x48] sm:$0xff] }
  0x1e   : > { %s2199_s18 = scalar_lea.vmem %s2863_s1, %s2175_s27  ;;  %713 = vmatpush.msra.mxu3 %v1743_v3  ;;  %v1797_v25 = vld [vmem:[%s2865_s3 + $0x40] sm:$0xff]  ;;  %v482_v63 = vld [vmem:[%s2167_s28 + $0x8] sm:$0xff]  ;;  %v483_v1 = vld [vmem:[%s2167_s28 + $0x10] sm:$0xff]  ;;  %s2646_s14 = scalar_lea.vmem %s2864_s2, %s2175_s27 }
  0x1f   : > { %430 = vmatpush.msra.mxu0 %v364_v4  ;;  %v2208_v8 = vld [vmem:[%s2199_s18] sm:$0xff]  ;;  %1917 = vmatpush.msra.mxu2 %v364_v4  ;;  %v2215_v9 = vld [vmem:[%s2199_s18 + $0x8] sm:$0xff]  ;;  %v2222_v10 = vld [vmem:[%s2199_s18 + $0x10] sm:$0xff]  ;;  %s2795_s9 = scalar_lea.vmem %s2867_s5, %s2175_s27 }
  0x20   : > { %714 = vmatpush.msra.mxu3 %v1742_v5  ;;  %v2229_v11 = vld [vmem:[%s2199_s18 + $0x18] sm:$0xff]  ;;  %v2236_v12 = vld [vmem:[%s2199_s18 + $0x20] sm:$0xff]  ;;  %v2243_v13 = vld [vmem:[%s2199_s18 + $0x28] sm:$0xff] }
  0x21   : > { %431 = vmatpush.msra.mxu0 %v363_v6  ;;  %1918 = vmatpush.msra.mxu2 %v363_v6  ;;  %v2250_v14 = vld [vmem:[%s2199_s18 + $0x30] sm:$0xff]  ;;  %v2257_v15 = vld [vmem:[%s2199_s18 + $0x38] sm:$0xff]  ;;  %v2264_v16 = vld [vmem:[%s2199_s18 + $0x40] sm:$0xff] }
  0x22   : > { %715 = vmatpush.msra.mxu3 %v1741_v7  ;;  %1709 = vmatmul.msk.f32.vlgmr.msra.gmra.mxu0 %vm367_vm0, %v2208_v8  ;;  %v2271_v17 = vld [vmem:[%s2199_s18 + $0x48] sm:$0xff]  ;;  %v2274_v18 = vld [vmem:[%s2199_s18 + $0x78] sm:$0xff]  ;;  %v2283_v19 = vld [vmem:[%s2199_s18 + $0x50] sm:$0xff] }
  0x23   : > { %1745 = vmatmul.msk.f32.vlgmr.msra.gmra.mxu3 %vm367_vm0, %v2208_v8  ;;  %1724 = vmatmul.msk.f32.vlgmr.msra.gmra.mxu2 %vm367_vm0, %v2274_v18  ;;  %v2290_v20 = vld [vmem:[%s2199_s18 + $0x58] sm:$0xff]  ;;  %v2306_v24 = vld [vmem:[%s2199_s18 + $0x60] sm:$0xff]  ;;  %v2316_v26 = vld [vmem:[%s2199_s18 + $0x68] sm:$0xff] }
  0x24   : > { %998 = vmatpush.msrb.mxu3 %v1800_v21  ;;  %v2323_v27 = vld [vmem:[%s2199_s18 + $0x70] sm:$0xff]  ;;  %v481_v61 = vld [vmem:[%s2167_s28] sm:$0xff]  ;;  %v484_v4 = vld [vmem:[%s2167_s28 + $0x18] sm:$0xff] }
  0x25   : > { %v1761_v2 = vld [vmem:[%s2167_s28 + $0x80] sm:$0xff]  ;;  %v1762_v5 = vld [vmem:[%s2167_s28 + $0x88] sm:$0xff]  ;;  %v1763_v21 = vld [vmem:[%s2167_s28 + $0x90] sm:$0xff] }
  0x26   : > { %999 = vmatpush.msrb.mxu3 %v1799_v22  ;;  %v485_v7 = vld [vmem:[%s2167_s28 + $0x20] sm:$0xff] }
  0x28   : > { %1000 = vmatpush.msrb.mxu3 %v1798_v23  ;;  %v486_v23 = vld [vmem:[%s2167_s28 + $0x28] sm:$0xff] }
  0x2a   : > { %1710 = vmatmul.msk.f32.gmra.mxu0 %vm367_vm0, %v2215_v9  ;;  %1001 = vmatpush.msrb.mxu3 %v1797_v25  ;;  %v1764_v25 = vld [vmem:[%s2167_s28 + $0x98] sm:$0xff] }
  0x2b   : > { %1746 = vmatmul.msk.f32.gmra.mxu3 %vm367_vm0, %v2215_v9 }
  0x32   : > { %1711 = vmatmul.msk.f32.gmra.mxu0 %vm367_vm0, %v2222_v10 }
  0x33   : > { %1747 = vmatmul.msk.f32.gmra.mxu3 %vm367_vm0, %v2222_v10 }
  0x3a   : > { %1712 = vmatmul.msk.f32.gmra.mxu0 %vm367_vm0, %v2229_v11 }
  0x3b   : > { %1748 = vmatmul.msk.f32.gmra.mxu3 %vm367_vm0, %v2229_v11 }
  0x42   : > { %1713 = vmatmul.msk.f32.gmra.mxu0 %vm367_vm0, %v2236_v12 }
  0x43   : > { %1749 = vmatmul.msk.f32.gmra.mxu3 %vm367_vm0, %v2236_v12 }
  0x4a   : > { %1714 = vmatmul.msk.f32.gmra.mxu0 %vm367_vm0, %v2243_v13 }
  0x4b   : > { %1750 = vmatmul.msk.f32.gmra.mxu3 %vm367_vm0, %v2243_v13 }
  0x52   : > { %1715 = vmatmul.msk.f32.gmra.mxu0 %vm367_vm0, %v2250_v14 }
  0x53   : > { %1751 = vmatmul.msk.f32.gmra.mxu3 %vm367_vm0, %v2250_v14 }
  0x5a   : > { %1716 = vmatmul.msk.f32.gmra.mxu0 %vm367_vm0, %v2257_v15 }
  0x5b   : > { %1752 = vmatmul.msk.f32.gmra.mxu3 %vm367_vm0, %v2257_v15 }
  0x62   : > { %1717 = vmatmul.msk.f32.gmra.mxu0 %vm367_vm0, %v2264_v16 }
  0x63   : > { %1753 = vmatmul.msk.f32.gmra.mxu3 %vm367_vm0, %v2264_v16 }
  0x6a   : > { %1718 = vmatmul.msk.f32.gmra.mxu0 %vm367_vm0, %v2271_v17 }
  0x6b   : > { %1754 = vmatmul.msk.f32.gmra.mxu3 %vm367_vm0, %v2271_v17 }
  0x72   : > { %1719 = vmatmul.msk.f32.gmra.mxu0 %vm367_vm0, %v2283_v19 }
  0x73   : > { %1755 = vmatmul.msk.f32.gmra.mxu3 %vm367_vm0, %v2283_v19 }
  0x7a   : > { %1720 = vmatmul.msk.f32.gmra.mxu0 %vm367_vm0, %v2290_v20 }
  0x7b   : > { %1756 = vmatmul.msk.f32.gmra.mxu3 %vm367_vm0, %v2290_v20 }
  0x82   : > { %1721 = vmatmul.msk.f32.gmra.mxu0 %vm367_vm0, %v2306_v24 }
  0x83   : > { %1757 = vmatmul.msk.f32.gmra.mxu3 %vm367_vm0, %v2306_v24 }
  0x8a   : > { %1722 = vmatmul.msk.f32.gmra.mxu0 %vm367_vm0, %v2316_v26 }
  0x8b   : > { %1758 = vmatmul.msk.f32.gmra.mxu3 %vm367_vm0, %v2316_v26 }
  0x92   : > { %1723 = vmatmul.msk.f32.gmra.mxu0 %vm367_vm0, %v2323_v27 }
  0x93   : > { %1759 = vmatmul.msk.f32.gmra.mxu3 %vm367_vm0, %v2323_v27 }
  0x9b   : > { %1760 = vmatmul.msk.f32.gmra.mxu3 %vm367_vm0, %v2274_v18 }
  0x9f   : > { %v2331_v28 = vpop.f32.mrf.mxu0 }
  0xa3   : > { %1801 = vmatmul.msk.f32.vlgmr.msrb.gmra.mxu3 %vm367_vm0, %v2208_v8 }
  0xa6   : > { %v2335_v29 = vpop.f32.mrf.mxu3  ;;  %v478_v48 = vpop.f32.mrf.mxu2 }
  0xa7   : > { %v2337_v30 = vpop.f32.mrf.mxu0  ;;  %497 = vmatpush.msra.mxu1 %v478_v48  ;;  %v564_v48 = vld [vmem:[%s2866_s4 + $0x10] sm:$0xff] }
  0xab   : > { %1802 = vmatmul.msk.f32.gmra.mxu3 %vm367_vm0, %v2215_v9 }
  0xae   : > { %v2341_v31 = vpop.f32.mrf.mxu3 }
  0xaf   : > { %v439_v32 = vpop.f32.mrf.mxu0 }
  0xb3   : > { %1803 = vmatmul.msk.f32.gmra.mxu3 %vm367_vm0, %v2222_v10 }
  0xb6   : > { %v2345_v33 = vpop.f32.mrf.mxu3 }
  0xb7   : > { %v442_v34 = vpop.f32.mrf.mxu0 }
  0xbb   : > { %1804 = vmatmul.msk.f32.gmra.mxu3 %vm367_vm0, %v2229_v11 }
  0xbe   : > { %v2349_v35 = vpop.f32.mrf.mxu3 }
  0xbf   : > { %v445_v36 = vpop.f32.mrf.mxu0 }
  0xc3   : > { %1805 = vmatmul.msk.f32.gmra.mxu3 %vm367_vm0, %v2236_v12 }
  0xc6   : > { %v2353_v37 = vpop.f32.mrf.mxu3 }
  0xc7   : > { %v448_v38 = vpop.f32.mrf.mxu0 }
  0xcb   : > { %1806 = vmatmul.msk.f32.gmra.mxu3 %vm367_vm0, %v2243_v13 }
  0xce   : > { %v732_v39 = vpop.f32.mrf.mxu3 }
  0xcf   : > { %v451_v40 = vpop.f32.mrf.mxu0 }
  0xd3   : > { %1807 = vmatmul.msk.f32.gmra.mxu3 %vm367_vm0, %v2250_v14 }
  0xd6   : > { %v735_v41 = vpop.f32.mrf.mxu3 }
  0xd7   : > { %v454_v42 = vpop.f32.mrf.mxu0 }
  0xdb   : > { %1808 = vmatmul.msk.f32.gmra.mxu3 %vm367_vm0, %v2257_v15 }
  0xde   : > { %v738_v43 = vpop.f32.mrf.mxu3 }
  0xdf   : > { %v457_v44 = vpop.f32.mrf.mxu0 }
  0xe3   : > { %1809 = vmatmul.msk.f32.gmra.mxu3 %vm367_vm0, %v2264_v16 }
  0xe6   : > { %v741_v45 = vpop.f32.mrf.mxu3 }
  0xe7   : > { %v460_v46 = vpop.f32.mrf.mxu0 }
  0xeb   : > { %1810 = vmatmul.msk.f32.gmra.mxu3 %vm367_vm0, %v2271_v17 }
  0xee   : > { %v744_v47 = vpop.f32.mrf.mxu3 }
  0xef   : > { %v463_v49 = vpop.f32.mrf.mxu0 }
  0xf3   : > { %1811 = vmatmul.msk.f32.gmra.mxu3 %vm367_vm0, %v2283_v19 }
  0xf6   : > { %v747_v50 = vpop.f32.mrf.mxu3 }
  0xf7   : > { %v466_v51 = vpop.f32.mrf.mxu0 }
  0xfb   : > { %1812 = vmatmul.msk.f32.gmra.mxu3 %vm367_vm0, %v2290_v20 }
  0xfe   : > { %v750_v52 = vpop.f32.mrf.mxu3 }
  0xff   : > { %v469_v53 = vpop.f32.mrf.mxu0 }
 0x103   : > { %1813 = vmatmul.msk.f32.gmra.mxu3 %vm367_vm0, %v2306_v24 }
 0x106   : > { %v753_v54 = vpop.f32.mrf.mxu3 }
 0x107   : > { %v472_v55 = vpop.f32.mrf.mxu0 }
 0x10b   : > { %1814 = vmatmul.msk.f32.gmra.mxu3 %vm367_vm0, %v2316_v26 }
 0x10e   : > { %v756_v56 = vpop.f32.mrf.mxu3 }
 0x10f   : > { %v475_v57 = vpop.f32.mrf.mxu0 }
 0x110   : > { %498 = vmatpush.msra.mxu1 %v475_v57  ;;  %v495_v57 = vld [vmem:[%s2167_s28 + $0x70] sm:$0xff] }
 0x112   : > { %499 = vmatpush.msra.mxu1 %v472_v55  ;;  %v1772_v55 = vld [vmem:[%s2167_s28 + $0xd8] sm:$0xff] }
 0x113   : > { %1815 = vmatmul.msk.f32.gmra.mxu3 %vm367_vm0, %v2323_v27 }
 0x114   : > { %500 = vmatpush.msra.mxu1 %v469_v53 }
 0x116   : > { %v759_v58 = vpop.f32.mrf.mxu3  ;;  %501 = vmatpush.msra.mxu1 %v466_v51  ;;  %v493_v51 = vld [vmem:[%s2167_s28 + $0x60] sm:$0xff] }
 0x118   : > { %502 = vmatpush.msra.mxu1 %v463_v49  ;;  %v563_v49 = vld [vmem:[%s2866_s4 + $0x8] sm:$0xff] }
 0x11a   : > { %503 = vmatpush.msra.mxu1 %v460_v46  ;;  %v565_v46 = vld [vmem:[%s2866_s4 + $0x18] sm:$0xff] }
 0x11b   : > { %1816 = vmatmul.msk.f32.gmra.mxu3 %vm367_vm0, %v2274_v18  ;;  %626 = vmatpush.msrb.mxu2 %v565_v46 }
 0x11c   : > { %504 = vmatpush.msra.mxu1 %v457_v44  ;;  %v492_v44 = vld [vmem:[%s2167_s28 + $0x58] sm:$0xff] }
 0x11d   : > { %627 = vmatpush.msrb.mxu2 %v564_v48 }
 0x11e   : > { %v762_v59 = vpop.f32.mrf.mxu3  ;;  %505 = vmatpush.msra.mxu1 %v454_v42  ;;  %v1769_v42 = vld [vmem:[%s2167_s28 + $0xc0] sm:$0xff] }
 0x11f   : > { %782 = vmatpush.msrb.mxu0 %v762_v59  ;;  %628 = vmatpush.msrb.mxu2 %v563_v49 }
 0x120   : > { %506 = vmatpush.msra.mxu1 %v451_v40 }
 0x121   : > { %783 = vmatpush.msrb.mxu0 %v759_v58  ;;  %v1773_v58 = vld [vmem:[%s2167_s28 + $0xe0] sm:$0xff] }
 0x122   : > { %507 = vmatpush.msra.mxu1 %v448_v38  ;;  %v490_v38 = vld [vmem:[%s2167_s28 + $0x48] sm:$0xff] }
 0x123   : > { %784 = vmatpush.msrb.mxu0 %v756_v56 }
 0x124   : > { %508 = vmatpush.msra.mxu1 %v445_v36  ;;  %v1767_v36 = vld [vmem:[%s2167_s28 + $0xb0] sm:$0xff] }
 0x125   : > { %785 = vmatpush.msrb.mxu0 %v753_v54  ;;  %v494_v54 = vld [vmem:[%s2167_s28 + $0x68] sm:$0xff] }
 0x126   : > { %v2377_v60 = vpop.f32.mrf.mxu3  ;;  %509 = vmatpush.msra.mxu1 %v442_v34 }
 0x127   : > { %786 = vmatpush.msrb.mxu0 %v750_v52  ;;  %v1771_v52 = vld [vmem:[%s2167_s28 + $0xd0] sm:$0xff] }
 0x128   : > { %510 = vmatpush.msra.mxu1 %v439_v32  ;;  %v488_v32 = vld [vmem:[%s2167_s28 + $0x38] sm:$0xff] }
 0x129   : > { %787 = vmatpush.msrb.mxu0 %v747_v50  ;;  %v562_v50 = vld [vmem:[%s2866_s4] sm:$0xff] }
 0x12a   : > { %511 = vmatpush.msra.mxu1 %v2337_v30  ;;  %v1765_v30 = vld [vmem:[%s2167_s28 + $0xa0] sm:$0xff]  ;;  %629 = vmatpush.msrb.mxu2 %v562_v50  ;;  %v1828_v50 = vld [vmem:[%s2167_s28 + $0x158] sm:$0xff] }
 0x12b   : > { %788 = vmatpush.msrb.mxu0 %v744_v47 }
 0x12c   : > { %512 = vmatpush.msra.mxu1 %v2331_v28 }
 0x12d   : > { %789 = vmatpush.msrb.mxu0 %v741_v45  ;;  %513 = vmatmul.f32.vlgmr.msra.gmra.mxu1 %v481_v61  ;;  %v1770_v45 = vld [vmem:[%s2167_s28 + $0xc8] sm:$0xff]  ;;  %v496_v61 = vld [vmem:[%s2167_s28 + $0x78] sm:$0xff] }
 0x12e   : > { %v2382_v62 = vpop.f32.mrf.mxu3 }
 0x12f   : > { %790 = vmatpush.msrb.mxu0 %v738_v43 }
 0x131   : > { %791 = vmatpush.msrb.mxu0 %v735_v41  ;;  %v491_v41 = vld [vmem:[%s2167_s28 + $0x50] sm:$0xff] }
 0x133   : > { %792 = vmatpush.msrb.mxu0 %v732_v39  ;;  %v1768_v39 = vld [vmem:[%s2167_s28 + $0xb8] sm:$0xff] }
 0x135   : > { %793 = vmatpush.msrb.mxu0 %v2353_v37  ;;  %516 = vmatmul.f32.gmra.mxu1 %v482_v63  ;;  %v1774_v63 = vld [vmem:[%s2167_s28 + $0xe8] sm:$0xff] }
 0x136   : > { %v2386_v0 = vpop.f32.mrf.mxu3 }
 0x137   : > { %794 = vmatpush.msrb.mxu0 %v2349_v35  ;;  %v489_v35 = vld [vmem:[%s2167_s28 + $0x40] sm:$0xff] }
 0x139   : > { %795 = vmatpush.msrb.mxu0 %v2345_v33  ;;  %v1766_v33 = vld [vmem:[%s2167_s28 + $0xa8] sm:$0xff] }
 0x13b   : > { %796 = vmatpush.msrb.mxu0 %v2341_v31 }
 0x13d   : > { %797 = vmatpush.msrb.mxu0 %v2335_v29  ;;  %519 = vmatmul.f32.gmra.mxu1 %v483_v1  ;;  %v487_v29 = vld [vmem:[%s2167_s28 + $0x30] sm:$0xff] }
 0x13e   : > { %798 = vmatmul.f32.vlgmr.msrb.gmra.mxu0 %v1761_v2  ;;  %v2394_v3 = vpop.f32.mrf.mxu3  ;;  %v1775_v2 = vld [vmem:[%s2167_s28 + $0xf0] sm:$0xff] }
 0x145   : > { %522 = vmatmul.f32.gmra.mxu1 %v484_v4 }
 0x146   : > { %801 = vmatmul.f32.gmra.mxu0 %v1762_v5  ;;  %v2398_v6 = vpop.f32.mrf.mxu3  ;;  %v1776_v5 = vld [vmem:[%s2167_s28 + $0xf8] sm:$0xff] }
 0x14d   : > { %525 = vmatmul.f32.gmra.mxu1 %v485_v7 }
 0x14e   : > { %804 = vmatmul.f32.gmra.mxu0 %v1763_v21  ;;  %v2402_v22 = vpop.f32.mrf.mxu3 }
 0x155   : > { %528 = vmatmul.f32.gmra.mxu1 %v486_v23  ;;  %v1818_v23 = vld [vmem:[%s2167_s28 + $0x108] sm:$0xff] }
 0x156   : > { %807 = vmatmul.f32.gmra.mxu0 %v1764_v25  ;;  %v2406_v28 = vpop.f32.mrf.mxu3  ;;  %v1820_v25 = vld [vmem:[%s2167_s28 + $0x118] sm:$0xff] }
 0x15d   : > { %531 = vmatmul.f32.gmra.mxu1 %v487_v29  ;;  %v1821_v29 = vld [vmem:[%s2167_s28 + $0x120] sm:$0xff] }
 0x15e   : > { %810 = vmatmul.f32.gmra.mxu0 %v1765_v30  ;;  %v2410_v31 = vpop.f32.mrf.mxu3 }
 0x165   : > { %534 = vmatmul.f32.gmra.mxu1 %v488_v32 }
 0x166   : > { %813 = vmatmul.f32.gmra.mxu0 %v1766_v33  ;;  %v2414_v34 = vpop.f32.mrf.mxu3 }
 0x16d   : > { %537 = vmatmul.f32.gmra.mxu1 %v489_v35 }
 0x16e   : > { %816 = vmatmul.f32.gmra.mxu0 %v1767_v36  ;;  %v1030_v37 = vpop.f32.mrf.mxu3 }
 0x175   : > { %540 = vmatmul.f32.gmra.mxu1 %v490_v38 }
 0x176   : > { %819 = vmatmul.f32.gmra.mxu0 %v1768_v39  ;;  %v1033_v40 = vpop.f32.mrf.mxu3 }
 0x17d   : > { %543 = vmatmul.f32.gmra.mxu1 %v491_v41  ;;  %v1780_v41 = vld [vmem:[%s2866_s4 + $0x38] sm:$0xff] }
 0x17e   : > { %822 = vmatmul.f32.gmra.mxu0 %v1769_v42  ;;  %v1036_v43 = vpop.f32.mrf.mxu3  ;;  %912 = vmatpush.msra.mxu2 %v1780_v41 }
 0x185   : > { %546 = vmatmul.f32.gmra.mxu1 %v492_v44  ;;  %v1826_v44 = vld [vmem:[%s2167_s28 + $0x148] sm:$0xff] }
 0x186   : > { %825 = vmatmul.f32.gmra.mxu0 %v1770_v45  ;;  %v1039_v47 = vpop.f32.mrf.mxu3 }
 0x18d   : > { %549 = vmatmul.f32.gmra.mxu1 %v493_v51  ;;  %v1779_v51 = vld [vmem:[%s2866_s4 + $0x30] sm:$0xff] }
 0x18e   : > { %828 = vmatmul.f32.gmra.mxu0 %v1771_v52  ;;  %v1042_v53 = vpop.f32.mrf.mxu3  ;;  %v1778_v52 = vld [vmem:[%s2866_s4 + $0x28] sm:$0xff]  ;;  %913 = vmatpush.msra.mxu2 %v1779_v51 }
 0x190   : > { %914 = vmatpush.msra.mxu2 %v1778_v52 }
 0x195   : > { %552 = vmatmul.f32.gmra.mxu1 %v494_v54 }
 0x196   : > { %831 = vmatmul.f32.gmra.mxu0 %v1772_v55  ;;  %v1045_v56 = vpop.f32.mrf.mxu3 }
 0x19d   : > { %555 = vmatmul.f32.gmra.mxu1 %v495_v57 }
 0x19e   : > { %834 = vmatmul.f32.gmra.mxu0 %v1773_v58  ;;  %v1048_v59 = vpop.f32.mrf.mxu3 }
 0x19f   : > { %1068 = vmatpush.msra.mxu0 %v1048_v59  ;;  %1919 = vmatpush.msrb.mxu1 %v1048_v59  ;;  %v1830_v59 = vld [vmem:[%s2167_s28 + $0x168] sm:$0xff] }
 0x1a1   : > { %1069 = vmatpush.msra.mxu0 %v1045_v56  ;;  %1920 = vmatpush.msrb.mxu1 %v1045_v56  ;;  %v1829_v56 = vld [vmem:[%s2167_s28 + $0x160] sm:$0xff] }
 0x1a3   : > { %1070 = vmatpush.msra.mxu0 %v1042_v53  ;;  %1921 = vmatpush.msrb.mxu1 %v1042_v53  ;;  %v1777_v53 = vld [vmem:[%s2866_s4 + $0x20] sm:$0xff] }
 0x1a4   : > { %915 = vmatpush.msra.mxu2 %v1777_v53 }
 0x1a5   : > { %1071 = vmatpush.msra.mxu0 %v1039_v47  ;;  %1922 = vmatpush.msrb.mxu1 %v1039_v47  ;;  %v1827_v47 = vld [vmem:[%s2167_s28 + $0x150] sm:$0xff] }
 0x1a6   : > { %558 = vmatmul.f32.gmra.mxu1 %v496_v61  ;;  %837 = vmatmul.f32.gmra.mxu0 %v1774_v63  ;;  %v1836_v61 = vld [vmem:[%s2866_s4 + $0x58] sm:$0xff]  ;;  %v1835_v63 = vld [vmem:[%s2866_s4 + $0x50] sm:$0xff] }
 0x1a7   : > { %1072 = vmatpush.msra.mxu0 %v1036_v43  ;;  %1923 = vmatpush.msrb.mxu1 %v1036_v43 }
 0x1a9   : > { %1073 = vmatpush.msra.mxu0 %v1033_v40  ;;  %1924 = vmatpush.msrb.mxu1 %v1033_v40  ;;  %v1825_v40 = vld [vmem:[%s2167_s28 + $0x140] sm:$0xff] }
 0x1aa   : > { %v514_v1 = vpop.f32.mrf.mxu1 }
 0x1ab   : > { %1074 = vmatpush.msra.mxu0 %v1030_v37  ;;  %1925 = vmatpush.msrb.mxu1 %v1030_v37  ;;  %v1824_v37 = vld [vmem:[%s2167_s28 + $0x138] sm:$0xff] }
 0x1ac   : > { %1725 = vmatmul.msk.f32.vlgmr.msrb.gmra.mxu2 %vm367_vm0, %v514_v1  ;;  %v1834_v1 = vld [vmem:[%s2866_s4 + $0x48] sm:$0xff] }
 0x1ad   : > { %1075 = vmatpush.msra.mxu0 %v2414_v34  ;;  %1926 = vmatpush.msrb.mxu1 %v2414_v34  ;;  %v1823_v34 = vld [vmem:[%s2167_s28 + $0x130] sm:$0xff] }
 0x1ae   : > { %840 = vmatmul.f32.gmra.mxu0 %v1775_v2  ;;  %v1833_v2 = vld [vmem:[%s2866_s4 + $0x40] sm:$0xff] }
 0x1af   : > { %1076 = vmatpush.msra.mxu0 %v2410_v31  ;;  %1927 = vmatpush.msrb.mxu1 %v2410_v31  ;;  %v1822_v31 = vld [vmem:[%s2167_s28 + $0x128] sm:$0xff] }
 0x1b1   : > { %1077 = vmatpush.msra.mxu0 %v2406_v28  ;;  %1928 = vmatpush.msrb.mxu1 %v2406_v28 }
 0x1b2   : > { %v517_v4 = vpop.f32.mrf.mxu1 }
 0x1b3   : > { %1078 = vmatpush.msra.mxu0 %v2402_v22  ;;  %1929 = vmatpush.msrb.mxu1 %v2402_v22  ;;  %v1817_v22 = vld [vmem:[%s2167_s28 + $0x100] sm:$0xff] }
 0x1b4   : > { %1726 = vmatmul.msk.f32.gmra.mxu2 %vm367_vm0, %v517_v4 }
 0x1b5   : > { %1079 = vmatpush.msra.mxu0 %v2398_v6  ;;  %1930 = vmatpush.msrb.mxu1 %v2398_v6  ;;  %v1819_v6 = vld [vmem:[%s2167_s28 + $0x110] sm:$0xff] }
 0x1b6   : > { %843 = vmatmul.f32.gmra.mxu0 %v1776_v5 }
 0x1b7   : > { %1080 = vmatpush.msra.mxu0 %v2394_v3  ;;  %1931 = vmatpush.msrb.mxu1 %v2394_v3 }
 0x1b9   : > { %1081 = vmatpush.msra.mxu0 %v2386_v0  ;;  %1932 = vmatpush.msrb.mxu1 %v2386_v0 }
 0x1ba   : > { %v520_v7 = vpop.f32.mrf.mxu1 }
 0x1bb   : > { %v2462_v21 = vpop.f32.mrf.mxu0  ;;  %1082 = vmatpush.msra.mxu0 %v2382_v62  ;;  %1933 = vmatpush.msrb.mxu1 %v2382_v62 }
 0x1bc   : > { %1727 = vmatmul.msk.f32.gmra.mxu2 %vm367_vm0, %v520_v7  ;;  %v1831_v7 = vld [vmem:[%s2167_s28 + $0x170] sm:$0xff] }
 0x1bd   : > { %1083 = vmatpush.msra.mxu0 %v2377_v60  ;;  %1934 = vmatpush.msrb.mxu1 %v2377_v60 }
 0x1be   : > { %1084 = vmatmul.f32.vlgmr.msra.gmra.mxu0 %v1817_v22  ;;  %1090 = vmatmul.f32.vlgmr.msrb.gmra.mxu1 %v1819_v6 }
 0x1bf   : > { %1198 = vmatpush.msrb.mxu0 %v1836_v61 }
 0x1c1   : > { %1199 = vmatpush.msrb.mxu0 %v1835_v63 }
 0x1c2   : > { %v523_v0 = vpop.f32.mrf.mxu1 }
 0x1c3   : > { %v2471_v3 = vpop.f32.mrf.mxu0  ;;  %1200 = vmatpush.msrb.mxu0 %v1834_v1 }
 0x1c4   : > { %1728 = vmatmul.msk.f32.gmra.mxu2 %vm367_vm0, %v523_v0  ;;  %v1832_v0 = vld [vmem:[%s2167_s28 + $0x178] sm:$0xff] }
 0x1c5   : > { %1201 = vmatpush.msrb.mxu0 %v1833_v2 }
 0x1c6   : > { %1087 = vmatmul.f32.gmra.mxu0 %v1818_v23  ;;  %1093 = vmatmul.f32.gmra.mxu1 %v1820_v25 }
 0x1ca   : > { %v526_v62 = vpop.f32.mrf.mxu1 }
 0x1cb   : > { %v2476_v28 = vpop.f32.mrf.mxu0 }
 0x1cc   : > { %1729 = vmatmul.msk.f32.gmra.mxu2 %vm367_vm0, %v526_v62 }
 0x1ce   : > { %1096 = vmatmul.f32.gmra.mxu1 %v1821_v29 }
 0x1d2   : > { %v529_v60 = vpop.f32.mrf.mxu1 }
 0x1d3   : > { %v2480_v30 = vpop.f32.mrf.mxu0 }
 0x1d4   : > { %1730 = vmatmul.msk.f32.gmra.mxu2 %vm367_vm0, %v529_v60 }
 0x1d6   : > { %1099 = vmatmul.f32.gmra.mxu1 %v1822_v31 }
 0x1da   : > { %v532_v32 = vpop.f32.mrf.mxu1 }
 0x1db   : > { %v2484_v33 = vpop.f32.mrf.mxu0 }
 0x1dc   : > { %1731 = vmatmul.msk.f32.gmra.mxu2 %vm367_vm0, %v532_v32 }
 0x1de   : > { %1102 = vmatmul.f32.gmra.mxu1 %v1823_v34 }
 0x1e2   : > { %v535_v35 = vpop.f32.mrf.mxu1 }
 0x1e3   : > { %v2488_v36 = vpop.f32.mrf.mxu0 }
 0x1e4   : > { %1732 = vmatmul.msk.f32.gmra.mxu2 %vm367_vm0, %v535_v35 }
 0x1e6   : > { %1105 = vmatmul.f32.gmra.mxu1 %v1824_v37 }
 0x1ea   : > { %v538_v38 = vpop.f32.mrf.mxu1 }
 0x1eb   : > { %v2492_v39 = vpop.f32.mrf.mxu0 }
 0x1ec   : > { %1733 = vmatmul.msk.f32.gmra.mxu2 %vm367_vm0, %v538_v38 }
 0x1ee   : > { %1108 = vmatmul.f32.gmra.mxu1 %v1825_v40 }
 0x1f2   : > { %v541_v42 = vpop.f32.mrf.mxu1 }
 0x1f3   : > { %v2499_v43 = vpop.f32.mrf.mxu0 }
 0x1f4   : > { %1734 = vmatmul.msk.f32.gmra.mxu2 %vm367_vm0, %v541_v42 }
 0x1f6   : > { %1111 = vmatmul.f32.gmra.mxu1 %v1826_v44 }
 0x1fa   : > { %v544_v45 = vpop.f32.mrf.mxu1 }
 0x1fb   : > { %v2503_v46 = vpop.f32.mrf.mxu0 }
 0x1fc   : > { %1735 = vmatmul.msk.f32.gmra.mxu2 %vm367_vm0, %v544_v45 }
 0x1fe   : > { %1114 = vmatmul.f32.gmra.mxu1 %v1827_v47  ;;  %v1855_v47 = vld [vmem:[%s2865_s3 + $0x70] sm:$0xff] }
 0x202   : > { %v547_v48 = vpop.f32.mrf.mxu1 }
 0x203   : > { %v2507_v49 = vpop.f32.mrf.mxu0 }
 0x204   : > { %1736 = vmatmul.msk.f32.gmra.mxu2 %vm367_vm0, %v547_v48 }
 0x206   : > { %1117 = vmatmul.f32.gmra.mxu1 %v1828_v50  ;;  %v1853_v50 = vld [vmem:[%s2865_s3 + $0x60] sm:$0xff] }
 0x20a   : > { %v550_v54 = vpop.f32.mrf.mxu1 }
 0x20b   : > { %v2520_v55 = vpop.f32.mrf.mxu0 }
 0x20c   : > { %1737 = vmatmul.msk.f32.gmra.mxu2 %vm367_vm0, %v550_v54 }
 0x20e   : > { %1120 = vmatmul.f32.gmra.mxu1 %v1829_v56 }
 0x212   : > { %v553_v57 = vpop.f32.mrf.mxu1 }
 0x213   : > { %v2524_v58 = vpop.f32.mrf.mxu0 }
 0x214   : > { %1738 = vmatmul.msk.f32.gmra.mxu2 %vm367_vm0, %v553_v57 }
 0x216   : > { %1123 = vmatmul.f32.gmra.mxu1 %v1830_v59  ;;  %v347_v59 = vld [vmem:[%s2646_s14] sm:$0xff] }
 0x21a   : > { %v556_v4 = vpop.f32.mrf.mxu1 }
 0x21b   : > { %v2540_v5 = vpop.f32.mrf.mxu0 }
 0x21c   : > { %1739 = vmatmul.msk.f32.gmra.mxu2 %vm367_vm0, %v556_v4  ;;  %v348_v4 = vld [vmem:[%s2646_s14 + $0x8] sm:$0xff] }
 0x21e   : > { %1126 = vmatmul.f32.gmra.mxu1 %v1831_v7 }
 0x223   : > { %v559_v22 = vpop.f32.mrf.mxu1  ;;  %v2544_v6 = vpop.f32.mrf.mxu0 }
 0x224   : > { %1740 = vmatmul.msk.f32.gmra.mxu2 %vm367_vm0, %v559_v22 }
 0x226   : > { %1129 = vmatmul.f32.gmra.mxu1 %v1832_v0 }
 0x22b   : > { %v2548_v23 = vpop.f32.mrf.mxu0 }
 0x22c   : > { %1781 = vmatmul.msk.f32.vlgmr.msra.gmra.mxu2 %vm367_vm0, %v2462_v21 }
 0x22f   : > { %v2552_v25 = vpop.f32.mrf.mxu2 }
 0x230   : > { %v679_v61 = vadd.f32 %v2552_v25, %v347_v59  ;;  %v350_v25 = vld [vmem:[%s2646_s14 + $0x18] sm:$0xff] }
 0x233   : > { %v2554_v62 = vpop.f32.mrf.mxu0 }
 0x234   : > { %1782 = vmatmul.msk.f32.gmra.mxu2 %vm367_vm0, %v2471_v3 }
 0x237   : > { %v2558_v29 = vpop.f32.mrf.mxu2 }
 0x23b   : > { %v1085_v60 = vpop.f32.mrf.mxu0  ;;  %v1091_v31 = vpop.f32.mrf.mxu1 }
 0x23c   : > { %1783 = vmatmul.msk.f32.gmra.mxu2 %vm367_vm0, %v2476_v28  ;;  %1837 = vmatmul.msk.f32.vlgmr.msrb.gmra.mxu0 %vm367_vm0, %v1085_v60  ;;  %v351_v60 = vld [vmem:[%s2646_s14 + $0x20] sm:$0xff] }
 0x23f   : > { %v2563_v32 = vpop.f32.mrf.mxu2 }
 0x243   : > { %v1088_v34 = vpop.f32.mrf.mxu0  ;;  %v1094_v21 = vpop.f32.mrf.mxu1 }
 0x244   : > { %1784 = vmatmul.msk.f32.gmra.mxu2 %vm367_vm0, %v2480_v30  ;;  %1838 = vmatmul.msk.f32.gmra.mxu0 %vm367_vm0, %v1088_v34  ;;  %v352_v34 = vld [vmem:[%s2646_s14 + $0x28] sm:$0xff] }
 0x247   : > { %v2568_v35 = vpop.f32.mrf.mxu2 }
 0x24b   : > { %v1097_v3 = vpop.f32.mrf.mxu1 }
 0x24c   : > { %1785 = vmatmul.msk.f32.gmra.mxu2 %vm367_vm0, %v2484_v33  ;;  %1839 = vmatmul.msk.f32.gmra.mxu0 %vm367_vm0, %v1091_v31 }
 0x24f   : > { %v2573_v28 = vpop.f32.mrf.mxu2 }
 0x253   : > { %v1100_v37 = vpop.f32.mrf.mxu1 }
 0x254   : > { %1786 = vmatmul.msk.f32.gmra.mxu2 %vm367_vm0, %v2488_v36  ;;  %1840 = vmatmul.msk.f32.gmra.mxu0 %vm367_vm0, %v1094_v21 }
 0x257   : > { %v2578_v38 = vpop.f32.mrf.mxu2 }
 0x25b   : > { %v1103_v30 = vpop.f32.mrf.mxu1 }
 0x25c   : > { %1787 = vmatmul.msk.f32.gmra.mxu2 %vm367_vm0, %v2492_v39  ;;  %1841 = vmatmul.msk.f32.gmra.mxu0 %vm367_vm0, %v1097_v3  ;;  %v1856_v39 = vld [vmem:[%s2865_s3 + $0x78] sm:$0xff]  ;;  %v353_v3 = vld [vmem:[%s2646_s14 + $0x30] sm:$0xff] }
 0x25d   : > { %1284 = vmatpush.msrb.mxu2 %v1856_v39 }
 0x25f   : > { %v2583_v40 = vpop.f32.mrf.mxu2  ;;  %1285 = vmatpush.msrb.mxu2 %v1855_v47  ;;  %v357_v47 = vld [vmem:[%s2646_s14 + $0x50] sm:$0xff] }
 0x263   : > { %v1106_v33 = vpop.f32.mrf.mxu1 }
 0x264   : > { %1788 = vmatmul.msk.f32.gmra.mxu2 %vm367_vm0, %v2499_v43  ;;  %1842 = vmatmul.msk.f32.gmra.mxu0 %vm367_vm0, %v1100_v37 }
 0x267   : > { %v2588_v41 = vpop.f32.mrf.mxu2 }
 0x26b   : > { %v1109_v36 = vpop.f32.mrf.mxu1 }
 0x26c   : > { %1789 = vmatmul.msk.f32.gmra.mxu2 %vm367_vm0, %v2503_v46  ;;  %1843 = vmatmul.msk.f32.gmra.mxu0 %vm367_vm0, %v1103_v30  ;;  %v354_v30 = vld [vmem:[%s2646_s14 + $0x38] sm:$0xff] }
 0x26f   : > { %v2596_v42 = vpop.f32.mrf.mxu2 }
 0x273   : > { %v1112_v43 = vpop.f32.mrf.mxu1 }
 0x274   : > { %1790 = vmatmul.msk.f32.gmra.mxu2 %vm367_vm0, %v2507_v49  ;;  %1844 = vmatmul.msk.f32.gmra.mxu0 %vm367_vm0, %v1106_v33  ;;  %v1854_v49 = vld [vmem:[%s2865_s3 + $0x68] sm:$0xff] }
 0x275   : > { %1286 = vmatpush.msrb.mxu2 %v1854_v49 }
 0x277   : > { %v2601_v44 = vpop.f32.mrf.mxu2  ;;  %1287 = vmatpush.msrb.mxu2 %v1853_v50  ;;  %v358_v50 = vld [vmem:[%s2646_s14 + $0x58] sm:$0xff] }
 0x27b   : > { %v1115_v46 = vpop.f32.mrf.mxu1 }
 0x27c   : > { %1791 = vmatmul.msk.f32.gmra.mxu2 %vm367_vm0, %v2520_v55  ;;  %1845 = vmatmul.msk.f32.gmra.mxu0 %vm367_vm0, %v1109_v36  ;;  %v355_v36 = vld [vmem:[%s2646_s14 + $0x40] sm:$0xff] }
 0x27f   : > { %v2606_v45 = vpop.f32.mrf.mxu2 }
 0x283   : > { %v1118_v51 = vpop.f32.mrf.mxu1 }
 0x284   : > { %1792 = vmatmul.msk.f32.gmra.mxu2 %vm367_vm0, %v2524_v58  ;;  %1846 = vmatmul.msk.f32.gmra.mxu0 %vm367_vm0, %v1112_v43  ;;  %v356_v43 = vld [vmem:[%s2646_s14 + $0x48] sm:$0xff] }
 0x287   : > { %v2614_v48 = vpop.f32.mrf.mxu2 }
 0x28b   : > { %v1121_v53 = vpop.f32.mrf.mxu1 }
 0x28c   : > { %1793 = vmatmul.msk.f32.gmra.mxu2 %vm367_vm0, %v2540_v5  ;;  %1847 = vmatmul.msk.f32.gmra.mxu0 %vm367_vm0, %v1115_v46  ;;  %v680_v5 = vadd.f32 %v2558_v29, %v348_v4 }
 0x28f   : > { %v2625_v52 = vpop.f32.mrf.mxu2 }
 0x293   : > { %v1124_v55 = vpop.f32.mrf.mxu1 }
 0x294   : > { %1794 = vmatmul.msk.f32.gmra.mxu2 %vm367_vm0, %v2544_v6  ;;  %1848 = vmatmul.msk.f32.gmra.mxu0 %vm367_vm0, %v1118_v51 }
 0x297   : > { %v2630_v54 = vpop.f32.mrf.mxu2 }
 0x29b   : > { %v1127_v58 = vpop.f32.mrf.mxu1 }
 0x29c   : > { %1795 = vmatmul.msk.f32.gmra.mxu2 %vm367_vm0, %v2548_v23  ;;  %1849 = vmatmul.msk.f32.gmra.mxu0 %vm367_vm0, %v1121_v53  ;;  %v359_v53 = vld [vmem:[%s2646_s14 + $0x60] sm:$0xff] }
 0x29f   : > { %v2635_v56 = vpop.f32.mrf.mxu2 }
 0x2a3   : > { %v1130_v2 = vpop.f32.mrf.mxu1 }
 0x2a4   : > { %1796 = vmatmul.msk.f32.gmra.mxu2 %vm367_vm0, %v2554_v62  ;;  %1850 = vmatmul.msk.f32.gmra.mxu0 %vm367_vm0, %v1124_v55 }
 0x2a7   : > { %v2640_v57 = vpop.f32.mrf.mxu2 }
 0x2ac   : > { %1851 = vmatmul.msk.f32.gmra.mxu0 %vm367_vm0, %v1127_v58  ;;  %1857 = vmatmul.msk.f32.vlgmr.msrb.gmra.mxu2 %vm367_vm0, %v2208_v8  ;;  %v349_v8 = vld [vmem:[%s2646_s14 + $0x10] sm:$0xff]  ;;  %v360_v58 = vld [vmem:[%s2646_s14 + $0x68] sm:$0xff] }
 0x2ad   : > { %v681_v6 = vadd.f32 %v2563_v32, %v349_v8 }
 0x2af   : > { %v917_v63 = vpop.f32.mrf.mxu2 }
 0x2b0   : > { %v2653_v1 = vadd.f32 %v917_v63, %v679_v61  ;;  %v361_v61 = vld [vmem:[%s2646_s14 + $0x70] sm:$0xff] }
 0x2b4   : > { %1852 = vmatmul.msk.f32.gmra.mxu0 %vm367_vm0, %v1130_v2  ;;  %1858 = vmatmul.msk.f32.gmra.mxu2 %vm367_vm0, %v2215_v9  ;;  %v682_v9 = vadd.f32 %v2568_v35, %v350_v25  ;;  %v362_v2 = vld [vmem:[%s2646_s14 + $0x78] sm:$0xff] }
 0x2b7   : > { %v920_v7 = vpop.f32.mrf.mxu2 }
 0x2b8   : > { %v2660_v22 = vadd.f32 %v920_v7, %v680_v5 }
 0x2bc   : > { %1859 = vmatmul.msk.f32.gmra.mxu2 %vm367_vm0, %v2222_v10  ;;  %v683_v10 = vadd.f32 %v2573_v28, %v351_v60 }
 0x2bf   : > { %v923_v0 = vpop.f32.mrf.mxu2 }
 0x2c0   : > { %v2666_v23 = vadd.f32 %v923_v0, %v681_v6 }
 0x2c4   : > { %1860 = vmatmul.msk.f32.gmra.mxu2 %vm367_vm0, %v2229_v11  ;;  %v684_v11 = vadd.f32 %v2578_v38, %v352_v34 }
 0x2c7   : > { %v926_v62 = vpop.f32.mrf.mxu2 }
 0x2c8   : > { %v2672_v29 = vadd.f32 %v926_v62, %v682_v9 }
 0x2cc   : > { %1861 = vmatmul.msk.f32.gmra.mxu2 %vm367_vm0, %v2236_v12  ;;  %v685_v12 = vadd.f32 %v2583_v40, %v353_v3  ;;  %v1875_v3 = vld [vmem:[%s2167_s28 + $0x190] sm:$0xff] }
 0x2cf   : > { %v929_v31 = vpop.f32.mrf.mxu2 }
 0x2d0   : > { %v2678_v32 = vadd.f32 %v929_v31, %v683_v10 }
 0x2d4   : > { %1862 = vmatmul.msk.f32.gmra.mxu2 %vm367_vm0, %v2243_v13  ;;  %v686_v13 = vadd.f32 %v2588_v41, %v354_v30  ;;  %v1878_v30 = vld [vmem:[%s2167_s28 + $0x1a8] sm:$0xff] }
 0x2d7   : > { %v932_v21 = vpop.f32.mrf.mxu2 }
 0x2d8   : > { %v2684_v35 = vadd.f32 %v932_v21, %v684_v11  ;;  %v1874_v21 = vld [vmem:[%s2167_s28 + $0x188] sm:$0xff] }
 0x2dc   : > { %1863 = vmatmul.msk.f32.gmra.mxu2 %vm367_vm0, %v2250_v14  ;;  %v687_v14 = vadd.f32 %v2596_v42, %v355_v36  ;;  %v1881_v36 = vld [vmem:[%s2167_s28 + $0x1c0] sm:$0xff] }
 0x2df   : > { %v935_v28 = vpop.f32.mrf.mxu2 }
 0x2e0   : > { %v2690_v37 = vadd.f32 %v935_v28, %v685_v12  ;;  %v1876_v12 = vld [vmem:[%s2167_s28 + $0x198] sm:$0xff]  ;;  %v1877_v28 = vld [vmem:[%s2167_s28 + $0x1a0] sm:$0xff] }
 0x2e4   : > { %1864 = vmatmul.msk.f32.gmra.mxu2 %vm367_vm0, %v2257_v15  ;;  %v688_v15 = vadd.f32 %v2601_v44, %v356_v43  ;;  %v1892_v43 = vld [vmem:[%s2866_s4 + $0x78] sm:$0xff] }
 0x2e5   : > { %1484 = vmatpush.msra.mxu1 %v1892_v43 }
 0x2e7   : > { %v938_v38 = vpop.f32.mrf.mxu2 }
 0x2e8   : > { %v2696_v33 = vadd.f32 %v938_v38, %v686_v13  ;;  %v1879_v13 = vld [vmem:[%s2167_s28 + $0x1b0] sm:$0xff]  ;;  %v1880_v38 = vld [vmem:[%s2167_s28 + $0x1b8] sm:$0xff] }
 0x2ec   : > { %1865 = vmatmul.msk.f32.gmra.mxu2 %vm367_vm0, %v2264_v16  ;;  %v689_v16 = vadd.f32 %v2606_v45, %v357_v47  ;;  %v1890_v47 = vld [vmem:[%s2866_s4 + $0x68] sm:$0xff] }
 0x2ef   : > { %v941_v40 = vpop.f32.mrf.mxu2 }
 0x2f0   : > { %v2702_v39 = vadd.f32 %v941_v40, %v687_v14  ;;  %v1882_v14 = vld [vmem:[%s2167_s28 + $0x1c8] sm:$0xff]  ;;  %v1883_v40 = vld [vmem:[%s2167_s28 + $0x1d0] sm:$0xff] }
 0x2f4   : > { %1866 = vmatmul.msk.f32.gmra.mxu2 %vm367_vm0, %v2271_v17  ;;  %v690_v17 = vadd.f32 %v2614_v48, %v358_v50  ;;  %v1886_v50 = vld [vmem:[%s2167_s28 + $0x1e8] sm:$0xff] }
 0x2f7   : > { %v944_v41 = vpop.f32.mrf.mxu2 }
 0x2f8   : > { %v2708_v46 = vadd.f32 %v944_v41, %v688_v15  ;;  %v1884_v15 = vld [vmem:[%s2167_s28 + $0x1d8] sm:$0xff]  ;;  %v1891_v41 = vld [vmem:[%s2866_s4 + $0x70] sm:$0xff] }
 0x2f9   : > { %1485 = vmatpush.msra.mxu1 %v1891_v41 }
 0x2fb   : > { %1486 = vmatpush.msra.mxu1 %v1890_v47 }
 0x2fc   : > { %1867 = vmatmul.msk.f32.gmra.mxu2 %vm367_vm0, %v2283_v19  ;;  %v691_v19 = vadd.f32 %v2625_v52, %v359_v53 }
 0x2ff   : > { %v947_v42 = vpop.f32.mrf.mxu2 }
 0x300   : > { %v2714_v49 = vadd.f32 %v947_v42, %v689_v16  ;;  %v1885_v16 = vld [vmem:[%s2167_s28 + $0x1e0] sm:$0xff] }
 0x301   : > { %v1889_v42 = vld [vmem:[%s2866_s4 + $0x60] sm:$0xff] }
 0x302   : > { %1487 = vmatpush.msra.mxu1 %v1889_v42 }
 0x304   : > { %1868 = vmatmul.msk.f32.gmra.mxu2 %vm367_vm0, %v2290_v20  ;;  %v692_v20 = vadd.f32 %v2630_v54, %v360_v58 }
 0x307   : > { %v950_v44 = vpop.f32.mrf.mxu2 }
 0x308   : > { %v2720_v51 = vadd.f32 %v950_v44, %v690_v17  ;;  %v1887_v17 = vld [vmem:[%s2167_s28 + $0x1f0] sm:$0xff]  ;;  %v1888_v44 = vld [vmem:[%s2167_s28 + $0x1f8] sm:$0xff] }
 0x30c   : > { %1869 = vmatmul.msk.f32.gmra.mxu2 %vm367_vm0, %v2306_v24  ;;  %v693_v24 = vadd.f32 %v2635_v56, %v361_v61 }
 0x30f   : > { %v953_v45 = vpop.f32.mrf.mxu2 }
 0x310   : > { %v2726_v55 = vadd.f32 %v953_v45, %v691_v19 }
 0x314   : > { %1870 = vmatmul.msk.f32.gmra.mxu2 %vm367_vm0, %v2316_v26  ;;  %v694_v26 = vadd.f32 %v2640_v57, %v362_v2  ;;  %v1873_v57 = vld [vmem:[%s2167_s28 + $0x180] sm:$0xff] }
 0x317   : > { %v956_v48 = vpop.f32.mrf.mxu2 }
 0x318   : > { %v2732_v59 = vadd.f32 %v956_v48, %v692_v20 }
 0x31c   : > { %1871 = vmatmul.msk.f32.gmra.mxu2 %vm367_vm0, %v2323_v27 }
 0x31f   : > { %v959_v63 = vpop.f32.mrf.mxu2 }
 0x320   : > { %v2738_v52 = vadd.f32 %v959_v63, %v693_v24 }
 0x324   : > { %1872 = vmatmul.msk.f32.gmra.mxu2 %vm367_vm0, %v2274_v18 }
 0x327   : > { %v962_v4 = vpop.f32.mrf.mxu2 }
 0x328   : > { %v2744_v54 = vadd.f32 %v962_v4, %v694_v26 }
 0x32f   : > { %v1289_v5 = vpop.f32.mrf.mxu2 }
 0x337   : > { %v1292_v7 = vpop.f32.mrf.mxu2 }
 0x33f   : > { %v1295_v8 = vpop.f32.mrf.mxu2 }
 0x347   : > { %v1298_v6 = vpop.f32.mrf.mxu2 }
 0x34f   : > { %v1301_v0 = vpop.f32.mrf.mxu2 }
 0x357   : > { %v1304_v27 = vpop.f32.mrf.mxu2 }
 0x35f   : > { %v1307_v25 = vpop.f32.mrf.mxu2 }
 0x367   : > { %v1310_v56 = vpop.f32.mrf.mxu2 }
 0x36f   : > { %v1313_v9 = vpop.f32.mrf.mxu2 }
 0x377   : > { %v1316_v62 = vpop.f32.mrf.mxu2 }
 0x37f   : > { %v1319_v60 = vpop.f32.mrf.mxu2 }
 0x387   : > { %v1322_v10 = vpop.f32.mrf.mxu2 }
 0x38f   : > { %v1325_v31 = vpop.f32.mrf.mxu2 }
 0x397   : > { %v1328_v34 = vpop.f32.mrf.mxu2 }
 0x39f   : > { %v1331_v18 = vpop.f32.mrf.mxu2 }
 0x3a7   : > { %v1334_v11 = vpop.f32.mrf.mxu2 }
 0x3a8   : > { %1354 = vmatpush.msra.mxu3 %v1334_v11 }
 0x3aa   : > { %1355 = vmatpush.msra.mxu3 %v1331_v18 }
 0x3ac   : > { %1356 = vmatpush.msra.mxu3 %v1328_v34 }
 0x3ae   : > { %1357 = vmatpush.msra.mxu3 %v1325_v31 }
 0x3b0   : > { %1358 = vmatpush.msra.mxu3 %v1322_v10 }
 0x3b2   : > { %1359 = vmatpush.msra.mxu3 %v1319_v60 }
 0x3b4   : > { %1360 = vmatpush.msra.mxu3 %v1316_v62 }
 0x3b6   : > { %1361 = vmatpush.msra.mxu3 %v1313_v9 }
 0x3b8   : > { %1362 = vmatpush.msra.mxu3 %v1310_v56 }
 0x3ba   : > { %1363 = vmatpush.msra.mxu3 %v1307_v25 }
 0x3bc   : > { %1364 = vmatpush.msra.mxu3 %v1304_v27 }
 0x3be   : > { %1365 = vmatpush.msra.mxu3 %v1301_v0 }
 0x3c0   : > { %1366 = vmatpush.msra.mxu3 %v1298_v6 }
 0x3c2   : > { %1367 = vmatpush.msra.mxu3 %v1295_v8 }
 0x3c4   : > { %1368 = vmatpush.msra.mxu3 %v1292_v7 }
 0x3c6   : > { %1369 = vmatpush.msra.mxu3 %v1289_v5  ;;  %v1203_v5 = vpop.f32.mrf.mxu0 }
 0x3c7   : > { %1370 = vmatmul.f32.vlgmr.msra.gmra.mxu3 %v1873_v57  ;;  %v1251_v9 = vadd.f32 %v1203_v5, %v2653_v1 }
 0x3ce   : > { %v1206_v8 = vpop.f32.mrf.mxu0 }
 0x3cf   : > { %1373 = vmatmul.f32.gmra.mxu3 %v1874_v21  ;;  %v1252_v31 = vadd.f32 %v1206_v8, %v2660_v22 }
 0x3d6   : > { %v1209_v0 = vpop.f32.mrf.mxu0 }
 0x3d7   : > { %1376 = vmatmul.f32.gmra.mxu3 %v1875_v3  ;;  %v1253_v1 = vadd.f32 %v1209_v0, %v2666_v23 }
 0x3de   : > { %v1212_v56 = vpop.f32.mrf.mxu0 }
 0x3df   : > { %1379 = vmatmul.f32.gmra.mxu3 %v1876_v12  ;;  %v1254_v3 = vadd.f32 %v1212_v56, %v2672_v29 }
 0x3e6   : > { %v1215_v10 = vpop.f32.mrf.mxu0 }
 0x3e7   : > { %1382 = vmatmul.f32.gmra.mxu3 %v1877_v28  ;;  %v1255_v22 = vadd.f32 %v1215_v10, %v2678_v32 }
 0x3ee   : > { %v1218_v11 = vpop.f32.mrf.mxu0 }
 0x3ef   : > { %1385 = vmatmul.f32.gmra.mxu3 %v1878_v30 }
 0x3f6   : > { %v1221_v30 = vpop.f32.mrf.mxu0 }
 0x3f7   : > { %1388 = vmatmul.f32.gmra.mxu3 %v1879_v13  ;;  %v1257_v43 = vadd.f32 %v1221_v30, %v2690_v37 }
 0x3fe   : > { %v1224_v23 = vpop.f32.mrf.mxu0 }
 0x3ff   : > { %1391 = vmatmul.f32.gmra.mxu3 %v1880_v38  ;;  %v1258_v32 = vadd.f32 %v1224_v23, %v2696_v33 }
 0x406   : > { %v1227_v29 = vpop.f32.mrf.mxu0 }
 0x407   : > { %1394 = vmatmul.f32.gmra.mxu3 %v1881_v36  ;;  %v1256_v36 = vadd.f32 %v1218_v11, %v2684_v35  ;;  %v1259_v35 = vadd.f32 %v1227_v29, %v2702_v39 }
 0x40e   : > { %v1230_v47 = vpop.f32.mrf.mxu0 }
 0x40f   : > { %1397 = vmatmul.f32.gmra.mxu3 %v1882_v14  ;;  %v1260_v37 = vadd.f32 %v1230_v47, %v2708_v46 }
 0x417   : > { %1400 = vmatmul.f32.gmra.mxu3 %v1883_v40 }
 0x41f   : > { %1403 = vmatmul.f32.gmra.mxu3 %v1884_v15 }
 0x427   : > { %1406 = vmatmul.f32.gmra.mxu3 %v1885_v16 }
 0x42f   : > { %1409 = vmatmul.f32.gmra.mxu3 %v1886_v50 }
 0x437   : > { %1412 = vmatmul.f32.gmra.mxu3 %v1887_v17 }
 0x43f   : > { %1415 = vmatmul.f32.gmra.mxu3 %v1888_v44  ;;  %v1233_v44 = vpop.f32.mrf.mxu0 }
 0x447   : > { %v1236_v33 = vpop.f32.mrf.mxu0 }
 0x44a   : > { %v1371_v53 = vpop.f32.mrf.mxu3 }
 0x44b   : > { %1893 = vmatmul.msk.f32.vlgmr.msra.gmra.mxu1 %vm367_vm0, %v1371_v53 }
 0x44f   : > { %v1239_v39 = vpop.f32.mrf.mxu0 }
 0x450   : > { %v1263_v46 = vadd.f32 %v1239_v39, %v2726_v55 }
 0x452   : > { %v1374_v19 = vpop.f32.mrf.mxu3 }
 0x453   : > { %1894 = vmatmul.msk.f32.gmra.mxu1 %vm367_vm0, %v1374_v19 }
 0x45a   : > { %v1377_v45 = vpop.f32.mrf.mxu3 }
 0x45b   : > { %1895 = vmatmul.msk.f32.gmra.mxu1 %vm367_vm0, %v1377_v45  ;;  %v1261_v45 = vadd.f32 %v1233_v44, %v2714_v49 }
 0x462   : > { %v1380_v58 = vpop.f32.mrf.mxu3 }
 0x463   : > { %1896 = vmatmul.msk.f32.gmra.mxu1 %vm367_vm0, %v1380_v58 }
 0x46a   : > { %v1383_v20 = vpop.f32.mrf.mxu3 }
 0x46b   : > { %1897 = vmatmul.msk.f32.gmra.mxu1 %vm367_vm0, %v1383_v20 }
 0x472   : > { %v1386_v48 = vpop.f32.mrf.mxu3 }
 0x473   : > { %1898 = vmatmul.msk.f32.gmra.mxu1 %vm367_vm0, %v1386_v48  ;;  %v1262_v48 = vadd.f32 %v1236_v33, %v2720_v51 }
 0x47a   : > { %v1389_v61 = vpop.f32.mrf.mxu3 }
 0x47b   : > { %1899 = vmatmul.msk.f32.gmra.mxu1 %vm367_vm0, %v1389_v61 }
 0x482   : > { %v1392_v24 = vpop.f32.mrf.mxu3 }
 0x483   : > { %1900 = vmatmul.msk.f32.gmra.mxu1 %vm367_vm0, %v1392_v24 }
 0x48a   : > { %v1395_v63 = vpop.f32.mrf.mxu3 }
 0x48b   : > { %1901 = vmatmul.msk.f32.gmra.mxu1 %vm367_vm0, %v1395_v63  ;;  %v1242_v63 = vpop.f32.mrf.mxu0 }
 0x48c   : > { %v1264_v49 = vadd.f32 %v1242_v63, %v2732_v59 }
 0x492   : > { %v1398_v2 = vpop.f32.mrf.mxu3 }
 0x493   : > { %1902 = vmatmul.msk.f32.gmra.mxu1 %vm367_vm0, %v1398_v2 }
 0x49a   : > { %v1401_v26 = vpop.f32.mrf.mxu3 }
 0x49b   : > { %1903 = vmatmul.msk.f32.gmra.mxu1 %vm367_vm0, %v1401_v26 }
 0x4a2   : > { %v1404_v4 = vpop.f32.mrf.mxu3 }
 0x4a3   : > { %1904 = vmatmul.msk.f32.gmra.mxu1 %vm367_vm0, %v1404_v4 }
 0x4aa   : > { %v1407_v7 = vpop.f32.mrf.mxu3 }
 0x4ab   : > { %1905 = vmatmul.msk.f32.gmra.mxu1 %vm367_vm0, %v1407_v7  ;;  %v1245_v7 = vpop.f32.mrf.mxu0 }
 0x4ac   : > { %v1265_v51 = vadd.f32 %v1245_v7, %v2738_v52 }
 0x4b2   : > { %v1410_v6 = vpop.f32.mrf.mxu3 }
 0x4b3   : > { %1906 = vmatmul.msk.f32.gmra.mxu1 %vm367_vm0, %v1410_v6  ;;  %v1248_v55 = vpop.f32.mrf.mxu0 }
 0x4b4   : > { %v1266_v0 = vadd.f32 %v1248_v55, %v2744_v54 }
 0x4ba   : > { %v1413_v27 = vpop.f32.mrf.mxu3 }
 0x4bb   : > { %1907 = vmatmul.msk.f32.gmra.mxu1 %vm367_vm0, %v1413_v27 }
 0x4c2   : > { %v1416_v25 = vpop.f32.mrf.mxu3 }
 0x4c3   : > { %1908 = vmatmul.msk.f32.gmra.mxu1 %vm367_vm0, %v1416_v25 }
 0x4c8   : > { %v1489_v62 = vpop.f32.mrf.mxu1 }
 0x4c9   : > { %v1537_v60 = vadd.f32 %v1489_v62, %v1251_v9 }
 0x4cb   : > { %1553 = vst.msk [vmem:[%s2795_s9] sm:$0xff] %vm367_vm0, %v1537_v60 }
 0x4d0   : > { %v1492_v34 = vpop.f32.mrf.mxu1 }
 0x4d1   : > { %v1538_v18 = vadd.f32 %v1492_v34, %v1252_v31 }
 0x4d3   : > { %1554 = vst.msk [vmem:[%s2795_s9 + $0x8] sm:$0xff] %vm367_vm0, %v1538_v18 }
 0x4d8   : > { %v1495_v57 = vpop.f32.mrf.mxu1 }
 0x4d9   : > { %v1539_v21 = vadd.f32 %v1495_v57, %v1253_v1 }
 0x4db   : > { %1555 = vst.msk [vmem:[%s2795_s9 + $0x10] sm:$0xff] %vm367_vm0, %v1539_v21 }
 0x4e0   : > { %v1498_v12 = vpop.f32.mrf.mxu1 }
 0x4e1   : > { %v1540_v28 = vadd.f32 %v1498_v12, %v1254_v3 }
 0x4e3   : > { %1556 = vst.msk [vmem:[%s2795_s9 + $0x18] sm:$0xff] %vm367_vm0, %v1540_v28 }
 0x4e8   : > { %v1501_v13 = vpop.f32.mrf.mxu1 }
 0x4e9   : > { %v1541_v38 = vadd.f32 %v1501_v13, %v1255_v22 }
 0x4eb   : > { %1557 = vst.msk [vmem:[%s2795_s9 + $0x20] sm:$0xff] %vm367_vm0, %v1541_v38 }
 0x4f0   : > { %v1504_v14 = vpop.f32.mrf.mxu1 }
 0x4f1   : > { %v1542_v40 = vadd.f32 %v1504_v14, %v1256_v36 }
 0x4f3   : > { %1558 = vst.msk [vmem:[%s2795_s9 + $0x28] sm:$0xff] %vm367_vm0, %v1542_v40 }
 0x4f8   : > { %v1507_v15 = vpop.f32.mrf.mxu1 }
 0x4f9   : > { %v1543_v41 = vadd.f32 %v1507_v15, %v1257_v43 }
 0x4fb   : > { %1559 = vst.msk [vmem:[%s2795_s9 + $0x30] sm:$0xff] %vm367_vm0, %v1543_v41 }
 0x500   : > { %v1510_v16 = vpop.f32.mrf.mxu1 }
 0x501   : > { %v1544_v42 = vadd.f32 %v1510_v16, %v1258_v32 }
 0x503   : > { %1560 = vst.msk [vmem:[%s2795_s9 + $0x38] sm:$0xff] %vm367_vm0, %v1544_v42 }
 0x508   : > { %v1513_v50 = vpop.f32.mrf.mxu1 }
 0x509   : > { %v1545_v17 = vadd.f32 %v1513_v50, %v1259_v35 }
 0x50b   : > { %1561 = vst.msk [vmem:[%s2795_s9 + $0x40] sm:$0xff] %vm367_vm0, %v1545_v17 }
 0x510   : > { %v1516_v53 = vpop.f32.mrf.mxu1 }
 0x511   : > { %v1546_v19 = vadd.f32 %v1516_v53, %v1260_v37 }
 0x513   : > { %1562 = vst.msk [vmem:[%s2795_s9 + $0x48] sm:$0xff] %vm367_vm0, %v1546_v19 }
 0x518   : > { %v1519_v58 = vpop.f32.mrf.mxu1 }
 0x519   : > { %v1547_v20 = vadd.f32 %v1519_v58, %v1261_v45 }
 0x51b   : > { %1563 = vst.msk [vmem:[%s2795_s9 + $0x50] sm:$0xff] %vm367_vm0, %v1547_v20 }
 0x520   : > { %v1522_v61 = vpop.f32.mrf.mxu1 }
 0x521   : > { %v1548_v24 = vadd.f32 %v1522_v61, %v1262_v48 }
 0x523   : > { %1564 = vst.msk [vmem:[%s2795_s9 + $0x58] sm:$0xff] %vm367_vm0, %v1548_v24 }
 0x528   : > { %v1525_v2 = vpop.f32.mrf.mxu1 }
 0x529   : > { %v1549_v26 = vadd.f32 %v1525_v2, %v1263_v46 }
 0x52b   : > { %1565 = vst.msk [vmem:[%s2795_s9 + $0x60] sm:$0xff] %vm367_vm0, %v1549_v26 }
 0x530   : > { %v1528_v4 = vpop.f32.mrf.mxu1 }
 0x531   : > { %v1550_v5 = vadd.f32 %v1528_v4, %v1264_v49 }
 0x533   : > { %1566 = vst.msk [vmem:[%s2795_s9 + $0x68] sm:$0xff] %vm367_vm0, %v1550_v5 }
 0x538   : > { %v1531_v8 = vpop.f32.mrf.mxu1 }
 0x539   : > { %v1551_v6 = vadd.f32 %v1531_v8, %v1265_v51 }
 0x53b   : > { %1567 = vst.msk [vmem:[%s2795_s9 + $0x70] sm:$0xff] %vm367_vm0, %v1551_v6 }
 0x540   : > { %v1534_v27 = vpop.f32.mrf.mxu1 }
 0x541   : > { %v1552_v25 = vadd.f32 %v1534_v27, %v1266_v0 }
 0x543   : > { %1568 = vst.msk [vmem:[%s2795_s9 + $0x78] sm:$0xff] %vm367_vm0, %v1552_v25 }
 0x544 PF: > { %s18_s23 = sadd.s32 1, %s2072_s23   ;;  %s2870_s18 = smov %s2056_s19 }
 0x545   : > { %p15_p0 = scmp.ge.s32.totalorder %s18_s23, 4   ;;  %s2871_s19 = smov %s2060_s20 }
 0x546   : > { %s2872_s20 = smov %s2155_s30  ;;  %s2873_s21 = smov %s2068_s22 }
 0x547   : > { %s2874_s22 = smov %s2876_s25  ;;  %17 = sbr.rel (!%p15_p0) target bundleno = 4 (0x4), region = 95 }
 0x54c   :  { %1599 = vsyncpa [#allocation3], 1 }
 0x54d   :  { %1601 = vsyncpa [#allocation3 + $0x1], 1 }

</bundles_post_ra>
